<compile_context>
chip_gen: v6e
topology: v6e:2x2x1
jax: 0.10.0
libtpu: 0.0.40
codegen_flags: <defaults>
</compile_context>

<pallas_src>
import jax
import jax.numpy as jnp
from jax import lax
from jax.experimental import pallas as pl
from jax.experimental.pallas import tpu as pltpu


def _shift(x, d):
    """t[:, q] = x[:, (q + d) % N] for a static integer d (lane rotate via slices+concat)."""
    n = x.shape[-1]
    s = d % n
    if s == 0:
        return x
    return jnp.concatenate([x[:, s:], x[:, :s]], axis=-1)


def _conv3x3_relu(x, wk, masks, W, HW):
    """3x3 'same' conv + ReLU on flat activations.

    x    : (cin, Mtot) bf16, Mtot = nb*H*W, spatial flat on lanes (batch folded).
    wk   : (9, cout, cin) bf16, tap-major (kh, kw).
    masks: (ok_top, ok_bot, ok_left, ok_right) booleans of shape (1, Mtot); they zero the
           tap reads that fall outside the image (row pad, column pad, cross-image bleed).
    returns (cout, Mtot) f32, post-ReLU.
    """
    ok_top, ok_bot, ok_left, ok_right = masks
    cin, mtot = x.shape
    cout = wk.shape[1]
    acc = jnp.zeros((cout, mtot), jnp.float32)
    for kh in range(3):
        for kw in range(3):
            d = (kh - 1) * W + (kw - 1)           # flat lane offset of this tap
            t = _shift(x, d)
            m = None
            if kh == 0:
                m = ok_top
            elif kh == 2:
                m = ok_bot
            if kw == 0:
                m = ok_left if m is None else jnp.logical_and(m, ok_left)
            elif kw == 2:
                m = ok_right if m is None else jnp.logical_and(m, ok_right)
            if m is not None:
                t = jnp.where(m, t, jnp.zeros((), t.dtype))
            acc = acc + jnp.dot(wk[kh * 3 + kw], t,
                                preferred_element_type=jnp.float32)
    return jnp.maximum(acc, 0.0)                  # ReLU in f32


def _make_kernel(H, W, nb):
    HW = H * W

    def kernel(x_ref, w1_ref, w2_ref, s_ref, conv_ref, pool_ref):
        mtot = x_ref.shape[-1]                    # nb * H * W

        # Edge masks, computed once and reused by both convs.
        q = lax.broadcasted_iota(jnp.int32, (1, mtot), 1)
        col = q % W
        row = q % HW
        masks = (row >= W,            # kh == 0: needs a row above
                 row < HW - W,        # kh == 2: needs a row below
                 col >= 1,            # kw == 0: needs a column to the left
                 col < W - 1)         # kw == 2: needs a column to the right

        x = x_ref[...]                                               # (cin, Mtot) bf16
        y1 = _conv3x3_relu(x, w1_ref[...], masks, W, HW)             # (cmid, Mtot) f32
        y2 = _conv3x3_relu(y1.astype(jnp.bfloat16), w2_ref[...],
                           masks, W, HW)                             # (cout, Mtot) f32

        # 2x2 / stride-2 max pool straight from y2 (still in vregs): horizontal pair max,
        # then vertical pair max via lane shifts; wrapped lanes are never selected by S.
        th = jnp.maximum(y2, _shift(y2, 1))
        p4 = jnp.maximum(th, _shift(th, W))                          # (cout, Mtot) f32

        s = s_ref[...]                                               # (HW, Hh*Wh) f32
        for b in range(nb):
            sl = slice(b * HW, (b + 1) * HW)                         # lane-aligned slice
            conv_ref[b] = y2[:, sl]                                  # lane-dense store
            # Compaction to pooled positions with a 0/1 selection matmul (exact in f32).
            pool_ref[b] = jnp.dot(p4[:, sl], s,
                                  preferred_element_type=jnp.float32)

    return kernel


def m_encoder_forward(x_nchw, w1_oihw, w2_oihw, *, nb=None):
    """PyTorch-layout M_Encoder forward.

    x_nchw : (N, Cin, H, W) f32;  w1_oihw: (Cmid, Cin, 3, 3);  w2_oihw: (Cout, Cmid, 3, 3).
    Returns (conv (N, Cout, H, W), pool (N, Cout, H/2, W/2)) in f32.
    """
    n, cin, H, W = x_nchw.shape
    cmid = w1_oihw.shape[0]
    cout = w2_oihw.shape[0]
    assert w1_oihw.shape == (cmid, cin, 3, 3) and w2_oihw.shape == (cout, cmid, 3, 3)
    assert H % 2 == 0 and W % 2 == 0
    HW, Hh, Wh = H * W, H // 2, W // 2

    if nb is None:
        # Even grid >= 2 for v7x's 2 TensorCores; single-TC chips can pass nb=n instead.
        nb = n // 2 if (n % 2 == 0 and n >= 2) else n
    assert n % nb == 0
    assert nb == n or (nb * HW) % 128 == 0, "x blocks must stay lane-aligned"

    # Host-side layout glue (cheap XLA ops, outside the kernel):
    #   x -> (Cin, N*H*W) bf16  (channels on sublanes, flat spatial+batch on lanes)
    #   w -> (9, Cout, Cin) bf16, tap-major (kh, kw)
    x_flat = x_nchw.astype(jnp.bfloat16).transpose(1, 0, 2, 3).reshape(cin, n * HW)
    w1 = w1_oihw.transpose(2, 3, 0, 1).reshape(9, cmid, cin).astype(jnp.bfloat16)
    w2 = w2_oihw.transpose(2, 3, 0, 1).reshape(9, cout, cmid).astype(jnp.bfloat16)

    # 0/1 selection matrix for pool compaction: S[q, u] = 1 iff flat position q is the
    # top-left corner of pooled cell u.
    u = jnp.arange(Hh * Wh, dtype=jnp.int32)
    sel = 2 * (u // Wh) * W + 2 * (u % Wh)
    S = (jnp.arange(HW, dtype=jnp.int32)[:, None] == sel[None, :]).astype(jnp.float32)

    conv_flat, pool_flat = pl.pallas_call(
        _make_kernel(H, W, nb),
        out_shape=(jax.ShapeDtypeStruct((n, cout, HW), jnp.float32),
                   jax.ShapeDtypeStruct((n, cout, Hh * Wh), jnp.float32)),
        grid=(n // nb,),
        in_specs=[
            pl.BlockSpec((cin, nb * HW), lambda i: (0, i)),
            pl.BlockSpec((9, cmid, cin), lambda i: (0, 0, 0)),
            pl.BlockSpec((9, cout, cmid), lambda i: (0, 0, 0)),
            pl.BlockSpec((HW, Hh * Wh), lambda i: (0, 0)),
        ],
        out_specs=(
            pl.BlockSpec((nb, cout, HW), lambda i: (i, 0, 0)),
            pl.BlockSpec((nb, cout, Hh * Wh), lambda i: (i, 0, 0)),
        ),
        compiler_params=pltpu.CompilerParams(
            dimension_semantics=("parallel",)),   # v7x: shard the batch grid over 2 TCs
        cost_estimate=pl.CostEstimate(
            flops=(2 * n * HW * 9 * (cin * cmid + cmid * cout)
                   + 2 * n * cout * HW * (Hh * Wh)),
            transcendentals=0,
            bytes_accessed=(x_flat.size * 2 + (w1.size + w2.size) * 2 + S.size * 4
                            + n * cout * HW * 4 + n * cout * Hh * Wh * 4),
        ),
    )(x_flat, w1, w2, S)

    # Free metadata reshapes back to PyTorch NCHW.
    conv = conv_flat.reshape(n, cout, H, W)
    pool = pool_flat.reshape(n, cout, Hh, Wh)
    return conv, pool


if __name__ == "__main__":
    key = jax.random.PRNGKey(0)
    kx, k1, k2 = jax.random.split(key, 3)
    n, cin, cout, h, w = 2, 4, 8, 16, 16

    x = jax.random.normal(kx, (n, cin, h, w), dtype=jnp.float32)
    # Conv2d(bias=False) weights, OIHW, deterministic.
    w1 = 0.1 * jax.random.normal(k1, (cout, cin, 3, 3), dtype=jnp.float32)
    w2 = 0.1 * jax.random.normal(k2, (cout, cout, 3, 3), dtype=jnp.float32)

    conv, pool = jax.jit(m_encoder_forward)(x, w1, w2)
    jax.block_until_ready((conv, pool))

    # Plain-JAX NCHW reference (f32, highest precision).
    dn = ("NCHW", "OIHW", "NCHW")
    y = lax.conv_general_dilated(x, w1, (1, 1), "SAME", dimension_numbers=dn,
                                 precision=lax.Precision.HIGHEST)
    y = jnp.maximum(y, 0.0)
    y = lax.conv_general_dilated(y, w2, (1, 1), "SAME", dimension_numbers=dn,
                                 precision=lax.Precision.HIGHEST)
    y = jnp.maximum(y, 0.0)
    p = y.reshape(n, cout, h // 2, 2, w // 2, 2).max(axis=(3, 5))

    assert conv.shape == (n, cout, h, w) and pool.shape == (n, cout, h // 2, w // 2)
    # Kernel uses bf16 MXU operands with f32 accumulation -> bf16-appropriate tolerance.
    assert jnp.allclose(conv, y, atol=1e-2, rtol=1e-2), float(jnp.max(jnp.abs(conv - y)))
    assert jnp.allclose(pool, p, atol=1e-2, rtol=1e-2), float(jnp.max(jnp.abs(pool - p)))
    print("KERNEL_OK")
</pallas_src>

<mosaic_0001>
module attributes {stable_mosaic.version = 11 : i64} {
  func.func @kernel(%arg0: i32, %arg1: memref<4x256xbf16, #tpu.memory_space<vmem>>, %arg2: memref<9x8x4xbf16, #tpu.memory_space<vmem>>, %arg3: memref<9x8x8xbf16, #tpu.memory_space<vmem>>, %arg4: memref<256x64xf32, #tpu.memory_space<vmem>>, %arg5: memref<1x8x256xf32, #tpu.memory_space<vmem>>, %arg6: memref<1x8x64xf32, #tpu.memory_space<vmem>>) attributes {dimension_semantics = [#tpu.dimension_semantics<parallel>], iteration_bounds = array<i64: 2>, scalar_prefetch = 0 : i64, scratch_operands = 0 : i64, tpu.core_type = #tpu.core_type<tc>, window_params = [{transform_indices = @transform_0, window_bounds = array<i64: 4, 256>}, {pipeline_mode = #tpu.pipeline_mode<synchronous>, transform_indices = @transform_1, window_bounds = array<i64: 9, 8, 4>}, {pipeline_mode = #tpu.pipeline_mode<synchronous>, transform_indices = @transform_2, window_bounds = array<i64: 9, 8, 8>}, {pipeline_mode = #tpu.pipeline_mode<synchronous>, transform_indices = @transform_3, window_bounds = array<i64: 256, 64>}, {transform_indices = @transform_4, window_bounds = array<i64: 1, 8, 256>}, {transform_indices = @transform_5, window_bounds = array<i64: 1, 8, 64>}]} {
    %0 = tpu.iota {dimensions = array<i32: 1>} : vector<1x256xi32>
    %c16_i32 = arith.constant 16 : i32
    %c0_i32 = arith.constant 0 : i32
    %1 = arith.cmpi eq, %c16_i32, %c0_i32 : i32
    %c1_i32 = arith.constant 1 : i32
    %2 = arith.select %1, %c1_i32, %c16_i32 : i32
    %3 = vector.broadcast %2 : i32 to vector<1x256xi32>
    %4 = arith.remsi %0, %3 : vector<1x256xi32>
    %c0_i32_0 = arith.constant 0 : i32
    %5 = vector.broadcast %c0_i32_0 : i32 to vector<1x256xi32>
    %6 = arith.cmpi ne, %4, %5 : vector<1x256xi32>
    %c0_i32_1 = arith.constant 0 : i32
    %7 = vector.broadcast %c0_i32_1 : i32 to vector<1x256xi32>
    %8 = arith.cmpi slt, %4, %7 : vector<1x256xi32>
    %c0_i32_2 = arith.constant 0 : i32
    %9 = arith.cmpi slt, %2, %c0_i32_2 : i32
    %10 = vector.broadcast %9 : i1 to vector<1x256xi1>
    %11 = vector.broadcast %10 : vector<1x256xi1> to vector<1x256xi1>
    %12 = arith.xori %8, %11 : vector<1x256xi1>
    %13 = arith.andi %12, %6 : vector<1x256xi1>
    %14 = vector.broadcast %2 : i32 to vector<1x256xi32>
    %15 = arith.addi %4, %14 : vector<1x256xi32>
    %16 = arith.select %13, %15, %4 : vector<1x256xi1>, vector<1x256xi32>
    %c256_i32 = arith.constant 256 : i32
    %c0_i32_3 = arith.constant 0 : i32
    %17 = arith.cmpi eq, %c256_i32, %c0_i32_3 : i32
    %c1_i32_4 = arith.constant 1 : i32
    %18 = arith.select %17, %c1_i32_4, %c256_i32 : i32
    %19 = vector.broadcast %18 : i32 to vector<1x256xi32>
    %20 = arith.remsi %0, %19 : vector<1x256xi32>
    %c0_i32_5 = arith.constant 0 : i32
    %21 = vector.broadcast %c0_i32_5 : i32 to vector<1x256xi32>
    %22 = arith.cmpi ne, %20, %21 : vector<1x256xi32>
    %c0_i32_6 = arith.constant 0 : i32
    %23 = vector.broadcast %c0_i32_6 : i32 to vector<1x256xi32>
    %24 = arith.cmpi slt, %20, %23 : vector<1x256xi32>
    %c0_i32_7 = arith.constant 0 : i32
    %25 = arith.cmpi slt, %18, %c0_i32_7 : i32
    %26 = vector.broadcast %25 : i1 to vector<1x256xi1>
    %27 = vector.broadcast %26 : vector<1x256xi1> to vector<1x256xi1>
    %28 = arith.xori %24, %27 : vector<1x256xi1>
    %29 = arith.andi %28, %22 : vector<1x256xi1>
    %30 = vector.broadcast %18 : i32 to vector<1x256xi32>
    %31 = arith.addi %20, %30 : vector<1x256xi32>
    %32 = arith.select %29, %31, %20 : vector<1x256xi1>, vector<1x256xi32>
    %c16_i32_8 = arith.constant 16 : i32
    %33 = vector.broadcast %c16_i32_8 : i32 to vector<1x256xi32>
    %34 = arith.cmpi sge, %32, %33 : vector<1x256xi32>
    %c240_i32 = arith.constant 240 : i32
    %35 = vector.broadcast %c240_i32 : i32 to vector<1x256xi32>
    %36 = arith.cmpi slt, %32, %35 : vector<1x256xi32>
    %c1_i32_9 = arith.constant 1 : i32
    %37 = vector.broadcast %c1_i32_9 : i32 to vector<1x256xi32>
    %38 = arith.cmpi sge, %16, %37 : vector<1x256xi32>
    %c15_i32 = arith.constant 15 : i32
    %39 = vector.broadcast %c15_i32 : i32 to vector<1x256xi32>
    %40 = arith.cmpi slt, %16, %39 : vector<1x256xi32>
    %c0 = arith.constant 0 : index
    %c0_10 = arith.constant 0 : index
    %41 = vector.load %arg1[%c0, %c0_10] : memref<4x256xbf16, #tpu.memory_space<vmem>>, vector<4x256xbf16>
    %c0_11 = arith.constant 0 : index
    %c0_12 = arith.constant 0 : index
    %c0_13 = arith.constant 0 : index
    %42 = vector.load %arg2[%c0_11, %c0_12, %c0_13] : memref<9x8x4xbf16, #tpu.memory_space<vmem>>, vector<9x8x4xbf16>
    %cst = arith.constant 0.000000e+00 : f32
    %43 = vector.broadcast %cst : f32 to vector<8x256xf32>
    %44 = vector.extract_strided_slice %41 {offsets = [0, 239], sizes = [4, 17], strides = [1, 1]} : vector<4x256xbf16> to vector<4x17xbf16>
    %45 = vector.extract_strided_slice %41 {offsets = [0, 0], sizes = [4, 239], strides = [1, 1]} : vector<4x256xbf16> to vector<4x239xbf16>
    %46 = tpu.concatenate %44, %45 in 1 : vector<4x17xbf16>, vector<4x239xbf16> -> vector<4x256xbf16>
    %47 = arith.andi %34, %38 : vector<1x256xi1>
    %cst_14 = arith.constant 0.000000e+00 : bf16
    %48 = vector.shape_cast %47 : vector<1x256xi1> to vector<1x256xi1>
    %49 = vector.broadcast %48 : vector<1x256xi1> to vector<4x256xi1>
    %50 = vector.broadcast %cst_14 : bf16 to vector<4x256xbf16>
    %51 = arith.select %49, %46, %50 : vector<4x256xi1>, vector<4x256xbf16>
    %52 = vector.extract_strided_slice %42 {offsets = [0, 0, 0], sizes = [1, 8, 4], strides = [1, 1, 1]} : vector<9x8x4xbf16> to vector<1x8x4xbf16>
    %53 = vector.shape_cast %52 : vector<1x8x4xbf16> to vector<8x4xbf16>
    %cst_15 = arith.constant dense<0.000000e+00> : vector<8x256xf32>
    %54 = tpu.matmul %53, %51, %cst_15 {dimension_numbers = #tpu.dot_dimension_numbers<[1], [0], [0], [1], [0, 0, 1, 1], [], []>} : vector<8x4xbf16>, vector<4x256xbf16>, vector<8x256xf32> -> vector<8x256xf32>
    %55 = arith.addf %43, %54 : vector<8x256xf32>
    %56 = vector.extract_strided_slice %41 {offsets = [0, 240], sizes = [4, 16], strides = [1, 1]} : vector<4x256xbf16> to vector<4x16xbf16>
    %57 = vector.extract_strided_slice %41 {offsets = [0, 0], sizes = [4, 240], strides = [1, 1]} : vector<4x256xbf16> to vector<4x240xbf16>
    %58 = tpu.concatenate %56, %57 in 1 : vector<4x16xbf16>, vector<4x240xbf16> -> vector<4x256xbf16>
    %cst_16 = arith.constant 0.000000e+00 : bf16
    %59 = vector.shape_cast %34 : vector<1x256xi1> to vector<1x256xi1>
    %60 = vector.broadcast %59 : vector<1x256xi1> to vector<4x256xi1>
    %61 = vector.broadcast %cst_16 : bf16 to vector<4x256xbf16>
    %62 = arith.select %60, %58, %61 : vector<4x256xi1>, vector<4x256xbf16>
    %63 = vector.extract_strided_slice %42 {offsets = [1, 0, 0], sizes = [1, 8, 4], strides = [1, 1, 1]} : vector<9x8x4xbf16> to vector<1x8x4xbf16>
    %64 = vector.shape_cast %63 : vector<1x8x4xbf16> to vector<8x4xbf16>
    %cst_17 = arith.constant dense<0.000000e+00> : vector<8x256xf32>
    %65 = tpu.matmul %64, %62, %cst_17 {dimension_numbers = #tpu.dot_dimension_numbers<[1], [0], [0], [1], [0, 0, 1, 1], [], []>} : vector<8x4xbf16>, vector<4x256xbf16>, vector<8x256xf32> -> vector<8x256xf32>
    %66 = arith.addf %55, %65 : vector<8x256xf32>
    %67 = vector.extract_strided_slice %41 {offsets = [0, 241], sizes = [4, 15], strides = [1, 1]} : vector<4x256xbf16> to vector<4x15xbf16>
    %68 = vector.extract_strided_slice %41 {offsets = [0, 0], sizes = [4, 241], strides = [1, 1]} : vector<4x256xbf16> to vector<4x241xbf16>
    %69 = tpu.concatenate %67, %68 in 1 : vector<4x15xbf16>, vector<4x241xbf16> -> vector<4x256xbf16>
    %70 = arith.andi %34, %40 : vector<1x256xi1>
    %cst_18 = arith.constant 0.000000e+00 : bf16
    %71 = vector.shape_cast %70 : vector<1x256xi1> to vector<1x256xi1>
    %72 = vector.broadcast %71 : vector<1x256xi1> to vector<4x256xi1>
    %73 = vector.broadcast %cst_18 : bf16 to vector<4x256xbf16>
    %74 = arith.select %72, %69, %73 : vector<4x256xi1>, vector<4x256xbf16>
    %75 = vector.extract_strided_slice %42 {offsets = [2, 0, 0], sizes = [1, 8, 4], strides = [1, 1, 1]} : vector<9x8x4xbf16> to vector<1x8x4xbf16>
    %76 = vector.shape_cast %75 : vector<1x8x4xbf16> to vector<8x4xbf16>
    %cst_19 = arith.constant dense<0.000000e+00> : vector<8x256xf32>
    %77 = tpu.matmul %76, %74, %cst_19 {dimension_numbers = #tpu.dot_dimension_numbers<[1], [0], [0], [1], [0, 0, 1, 1], [], []>} : vector<8x4xbf16>, vector<4x256xbf16>, vector<8x256xf32> -> vector<8x256xf32>
    %78 = arith.addf %66, %77 : vector<8x256xf32>
    %79 = vector.extract_strided_slice %41 {offsets = [0, 255], sizes = [4, 1], strides = [1, 1]} : vector<4x256xbf16> to vector<4x1xbf16>
    %80 = vector.extract_strided_slice %41 {offsets = [0, 0], sizes = [4, 255], strides = [1, 1]} : vector<4x256xbf16> to vector<4x255xbf16>
    %81 = tpu.concatenate %79, %80 in 1 : vector<4x1xbf16>, vector<4x255xbf16> -> vector<4x256xbf16>
    %cst_20 = arith.constant 0.000000e+00 : bf16
    %82 = vector.shape_cast %38 : vector<1x256xi1> to vector<1x256xi1>
    %83 = vector.broadcast %82 : vector<1x256xi1> to vector<4x256xi1>
    %84 = vector.broadcast %cst_20 : bf16 to vector<4x256xbf16>
    %85 = arith.select %83, %81, %84 : vector<4x256xi1>, vector<4x256xbf16>
    %86 = vector.extract_strided_slice %42 {offsets = [3, 0, 0], sizes = [1, 8, 4], strides = [1, 1, 1]} : vector<9x8x4xbf16> to vector<1x8x4xbf16>
    %87 = vector.shape_cast %86 : vector<1x8x4xbf16> to vector<8x4xbf16>
    %cst_21 = arith.constant dense<0.000000e+00> : vector<8x256xf32>
    %88 = tpu.matmul %87, %85, %cst_21 {dimension_numbers = #tpu.dot_dimension_numbers<[1], [0], [0], [1], [0, 0, 1, 1], [], []>} : vector<8x4xbf16>, vector<4x256xbf16>, vector<8x256xf32> -> vector<8x256xf32>
    %89 = arith.addf %78, %88 : vector<8x256xf32>
    %90 = vector.extract_strided_slice %42 {offsets = [4, 0, 0], sizes = [1, 8, 4], strides = [1, 1, 1]} : vector<9x8x4xbf16> to vector<1x8x4xbf16>
    %91 = vector.shape_cast %90 : vector<1x8x4xbf16> to vector<8x4xbf16>
    %cst_22 = arith.constant dense<0.000000e+00> : vector<8x256xf32>
    %92 = tpu.matmul %91, %41, %cst_22 {dimension_numbers = #tpu.dot_dimension_numbers<[1], [0], [0], [1], [0, 0, 1, 1], [], []>} : vector<8x4xbf16>, vector<4x256xbf16>, vector<8x256xf32> -> vector<8x256xf32>
    %93 = arith.addf %89, %92 : vector<8x256xf32>
    %94 = vector.extract_strided_slice %41 {offsets = [0, 1], sizes = [4, 255], strides = [1, 1]} : vector<4x256xbf16> to vector<4x255xbf16>
    %95 = vector.extract_strided_slice %41 {offsets = [0, 0], sizes = [4, 1], strides = [1, 1]} : vector<4x256xbf16> to vector<4x1xbf16>
    %96 = tpu.concatenate %94, %95 in 1 : vector<4x255xbf16>, vector<4x1xbf16> -> vector<4x256xbf16>
    %cst_23 = arith.constant 0.000000e+00 : bf16
    %97 = vector.shape_cast %40 : vector<1x256xi1> to vector<1x256xi1>
    %98 = vector.broadcast %97 : vector<1x256xi1> to vector<4x256xi1>
    %99 = vector.broadcast %cst_23 : bf16 to vector<4x256xbf16>
    %100 = arith.select %98, %96, %99 : vector<4x256xi1>, vector<4x256xbf16>
    %101 = vector.extract_strided_slice %42 {offsets = [5, 0, 0], sizes = [1, 8, 4], strides = [1, 1, 1]} : vector<9x8x4xbf16> to vector<1x8x4xbf16>
    %102 = vector.shape_cast %101 : vector<1x8x4xbf16> to vector<8x4xbf16>
    %cst_24 = arith.constant dense<0.000000e+00> : vector<8x256xf32>
    %103 = tpu.matmul %102, %100, %cst_24 {dimension_numbers = #tpu.dot_dimension_numbers<[1], [0], [0], [1], [0, 0, 1, 1], [], []>} : vector<8x4xbf16>, vector<4x256xbf16>, vector<8x256xf32> -> vector<8x256xf32>
    %104 = arith.addf %93, %103 : vector<8x256xf32>
    %105 = vector.extract_strided_slice %41 {offsets = [0, 15], sizes = [4, 241], strides = [1, 1]} : vector<4x256xbf16> to vector<4x241xbf16>
    %106 = vector.extract_strided_slice %41 {offsets = [0, 0], sizes = [4, 15], strides = [1, 1]} : vector<4x256xbf16> to vector<4x15xbf16>
    %107 = tpu.concatenate %105, %106 in 1 : vector<4x241xbf16>, vector<4x15xbf16> -> vector<4x256xbf16>
    %108 = arith.andi %36, %38 : vector<1x256xi1>
    %cst_25 = arith.constant 0.000000e+00 : bf16
    %109 = vector.shape_cast %108 : vector<1x256xi1> to vector<1x256xi1>
    %110 = vector.broadcast %109 : vector<1x256xi1> to vector<4x256xi1>
    %111 = vector.broadcast %cst_25 : bf16 to vector<4x256xbf16>
    %112 = arith.select %110, %107, %111 : vector<4x256xi1>, vector<4x256xbf16>
    %113 = vector.extract_strided_slice %42 {offsets = [6, 0, 0], sizes = [1, 8, 4], strides = [1, 1, 1]} : vector<9x8x4xbf16> to vector<1x8x4xbf16>
    %114 = vector.shape_cast %113 : vector<1x8x4xbf16> to vector<8x4xbf16>
    %cst_26 = arith.constant dense<0.000000e+00> : vector<8x256xf32>
    %115 = tpu.matmul %114, %112, %cst_26 {dimension_numbers = #tpu.dot_dimension_numbers<[1], [0], [0], [1], [0, 0, 1, 1], [], []>} : vector<8x4xbf16>, vector<4x256xbf16>, vector<8x256xf32> -> vector<8x256xf32>
    %116 = arith.addf %104, %115 : vector<8x256xf32>
    %117 = vector.extract_strided_slice %41 {offsets = [0, 16], sizes = [4, 240], strides = [1, 1]} : vector<4x256xbf16> to vector<4x240xbf16>
    %118 = vector.extract_strided_slice %41 {offsets = [0, 0], sizes = [4, 16], strides = [1, 1]} : vector<4x256xbf16> to vector<4x16xbf16>
    %119 = tpu.concatenate %117, %118 in 1 : vector<4x240xbf16>, vector<4x16xbf16> -> vector<4x256xbf16>
    %cst_27 = arith.constant 0.000000e+00 : bf16
    %120 = vector.shape_cast %36 : vector<1x256xi1> to vector<1x256xi1>
    %121 = vector.broadcast %120 : vector<1x256xi1> to vector<4x256xi1>
    %122 = vector.broadcast %cst_27 : bf16 to vector<4x256xbf16>
    %123 = arith.select %121, %119, %122 : vector<4x256xi1>, vector<4x256xbf16>
    %124 = vector.extract_strided_slice %42 {offsets = [7, 0, 0], sizes = [1, 8, 4], strides = [1, 1, 1]} : vector<9x8x4xbf16> to vector<1x8x4xbf16>
    %125 = vector.shape_cast %124 : vector<1x8x4xbf16> to vector<8x4xbf16>
    %cst_28 = arith.constant dense<0.000000e+00> : vector<8x256xf32>
    %126 = tpu.matmul %125, %123, %cst_28 {dimension_numbers = #tpu.dot_dimension_numbers<[1], [0], [0], [1], [0, 0, 1, 1], [], []>} : vector<8x4xbf16>, vector<4x256xbf16>, vector<8x256xf32> -> vector<8x256xf32>
    %127 = arith.addf %116, %126 : vector<8x256xf32>
    %128 = vector.extract_strided_slice %41 {offsets = [0, 17], sizes = [4, 239], strides = [1, 1]} : vector<4x256xbf16> to vector<4x239xbf16>
    %129 = vector.extract_strided_slice %41 {offsets = [0, 0], sizes = [4, 17], strides = [1, 1]} : vector<4x256xbf16> to vector<4x17xbf16>
    %130 = tpu.concatenate %128, %129 in 1 : vector<4x239xbf16>, vector<4x17xbf16> -> vector<4x256xbf16>
    %131 = arith.andi %36, %40 : vector<1x256xi1>
    %cst_29 = arith.constant 0.000000e+00 : bf16
    %132 = vector.shape_cast %131 : vector<1x256xi1> to vector<1x256xi1>
    %133 = vector.broadcast %132 : vector<1x256xi1> to vector<4x256xi1>
    %134 = vector.broadcast %cst_29 : bf16 to vector<4x256xbf16>
    %135 = arith.select %133, %130, %134 : vector<4x256xi1>, vector<4x256xbf16>
    %136 = vector.extract_strided_slice %42 {offsets = [8, 0, 0], sizes = [1, 8, 4], strides = [1, 1, 1]} : vector<9x8x4xbf16> to vector<1x8x4xbf16>
    %137 = vector.shape_cast %136 : vector<1x8x4xbf16> to vector<8x4xbf16>
    %cst_30 = arith.constant dense<0.000000e+00> : vector<8x256xf32>
    %138 = tpu.matmul %137, %135, %cst_30 {dimension_numbers = #tpu.dot_dimension_numbers<[1], [0], [0], [1], [0, 0, 1, 1], [], []>} : vector<8x4xbf16>, vector<4x256xbf16>, vector<8x256xf32> -> vector<8x256xf32>
    %139 = arith.addf %127, %138 : vector<8x256xf32>
    %cst_31 = arith.constant 0.000000e+00 : f32
    %140 = vector.broadcast %cst_31 : f32 to vector<8x256xf32>
    %141 = arith.maximumf %139, %140 : vector<8x256xf32>
    %142 = arith.truncf %141 : vector<8x256xf32> to vector<8x256xbf16>
    %c0_32 = arith.constant 0 : index
    %c0_33 = arith.constant 0 : index
    %c0_34 = arith.constant 0 : index
    %143 = vector.load %arg3[%c0_32, %c0_33, %c0_34] : memref<9x8x8xbf16, #tpu.memory_space<vmem>>, vector<9x8x8xbf16>
    %cst_35 = arith.constant 0.000000e+00 : f32
    %144 = vector.broadcast %cst_35 : f32 to vector<8x256xf32>
    %145 = vector.extract_strided_slice %142 {offsets = [0, 239], sizes = [8, 17], strides = [1, 1]} : vector<8x256xbf16> to vector<8x17xbf16>
    %146 = vector.extract_strided_slice %142 {offsets = [0, 0], sizes = [8, 239], strides = [1, 1]} : vector<8x256xbf16> to vector<8x239xbf16>
    %147 = tpu.concatenate %145, %146 in 1 : vector<8x17xbf16>, vector<8x239xbf16> -> vector<8x256xbf16>
    %148 = arith.andi %34, %38 : vector<1x256xi1>
    %cst_36 = arith.constant 0.000000e+00 : bf16
    %149 = vector.shape_cast %148 : vector<1x256xi1> to vector<1x256xi1>
    %150 = vector.broadcast %149 : vector<1x256xi1> to vector<8x256xi1>
    %151 = vector.broadcast %cst_36 : bf16 to vector<8x256xbf16>
    %152 = arith.select %150, %147, %151 : vector<8x256xi1>, vector<8x256xbf16>
    %153 = vector.extract_strided_slice %143 {offsets = [0, 0, 0], sizes = [1, 8, 8], strides = [1, 1, 1]} : vector<9x8x8xbf16> to vector<1x8x8xbf16>
    %154 = vector.shape_cast %153 : vector<1x8x8xbf16> to vector<8x8xbf16>
    %cst_37 = arith.constant dense<0.000000e+00> : vector<8x256xf32>
    %155 = tpu.matmul %154, %152, %cst_37 {dimension_numbers = #tpu.dot_dimension_numbers<[1], [0], [0], [1], [0, 0, 1, 1], [], []>} : vector<8x8xbf16>, vector<8x256xbf16>, vector<8x256xf32> -> vector<8x256xf32>
    %156 = arith.addf %144, %155 : vector<8x256xf32>
    %157 = vector.extract_strided_slice %142 {offsets = [0, 240], sizes = [8, 16], strides = [1, 1]} : vector<8x256xbf16> to vector<8x16xbf16>
    %158 = vector.extract_strided_slice %142 {offsets = [0, 0], sizes = [8, 240], strides = [1, 1]} : vector<8x256xbf16> to vector<8x240xbf16>
    %159 = tpu.concatenate %157, %158 in 1 : vector<8x16xbf16>, vector<8x240xbf16> -> vector<8x256xbf16>
    %cst_38 = arith.constant 0.000000e+00 : bf16
    %160 = vector.shape_cast %34 : vector<1x256xi1> to vector<1x256xi1>
    %161 = vector.broadcast %160 : vector<1x256xi1> to vector<8x256xi1>
    %162 = vector.broadcast %cst_38 : bf16 to vector<8x256xbf16>
    %163 = arith.select %161, %159, %162 : vector<8x256xi1>, vector<8x256xbf16>
    %164 = vector.extract_strided_slice %143 {offsets = [1, 0, 0], sizes = [1, 8, 8], strides = [1, 1, 1]} : vector<9x8x8xbf16> to vector<1x8x8xbf16>
    %165 = vector.shape_cast %164 : vector<1x8x8xbf16> to vector<8x8xbf16>
    %cst_39 = arith.constant dense<0.000000e+00> : vector<8x256xf32>
    %166 = tpu.matmul %165, %163, %cst_39 {dimension_numbers = #tpu.dot_dimension_numbers<[1], [0], [0], [1], [0, 0, 1, 1], [], []>} : vector<8x8xbf16>, vector<8x256xbf16>, vector<8x256xf32> -> vector<8x256xf32>
    %167 = arith.addf %156, %166 : vector<8x256xf32>
    %168 = vector.extract_strided_slice %142 {offsets = [0, 241], sizes = [8, 15], strides = [1, 1]} : vector<8x256xbf16> to vector<8x15xbf16>
    %169 = vector.extract_strided_slice %142 {offsets = [0, 0], sizes = [8, 241], strides = [1, 1]} : vector<8x256xbf16> to vector<8x241xbf16>
    %170 = tpu.concatenate %168, %169 in 1 : vector<8x15xbf16>, vector<8x241xbf16> -> vector<8x256xbf16>
    %171 = arith.andi %34, %40 : vector<1x256xi1>
    %cst_40 = arith.constant 0.000000e+00 : bf16
    %172 = vector.shape_cast %171 : vector<1x256xi1> to vector<1x256xi1>
    %173 = vector.broadcast %172 : vector<1x256xi1> to vector<8x256xi1>
    %174 = vector.broadcast %cst_40 : bf16 to vector<8x256xbf16>
    %175 = arith.select %173, %170, %174 : vector<8x256xi1>, vector<8x256xbf16>
    %176 = vector.extract_strided_slice %143 {offsets = [2, 0, 0], sizes = [1, 8, 8], strides = [1, 1, 1]} : vector<9x8x8xbf16> to vector<1x8x8xbf16>
    %177 = vector.shape_cast %176 : vector<1x8x8xbf16> to vector<8x8xbf16>
    %cst_41 = arith.constant dense<0.000000e+00> : vector<8x256xf32>
    %178 = tpu.matmul %177, %175, %cst_41 {dimension_numbers = #tpu.dot_dimension_numbers<[1], [0], [0], [1], [0, 0, 1, 1], [], []>} : vector<8x8xbf16>, vector<8x256xbf16>, vector<8x256xf32> -> vector<8x256xf32>
    %179 = arith.addf %167, %178 : vector<8x256xf32>
    %180 = vector.extract_strided_slice %142 {offsets = [0, 255], sizes = [8, 1], strides = [1, 1]} : vector<8x256xbf16> to vector<8x1xbf16>
    %181 = vector.extract_strided_slice %142 {offsets = [0, 0], sizes = [8, 255], strides = [1, 1]} : vector<8x256xbf16> to vector<8x255xbf16>
    %182 = tpu.concatenate %180, %181 in 1 : vector<8x1xbf16>, vector<8x255xbf16> -> vector<8x256xbf16>
    %cst_42 = arith.constant 0.000000e+00 : bf16
    %183 = vector.shape_cast %38 : vector<1x256xi1> to vector<1x256xi1>
    %184 = vector.broadcast %183 : vector<1x256xi1> to vector<8x256xi1>
    %185 = vector.broadcast %cst_42 : bf16 to vector<8x256xbf16>
    %186 = arith.select %184, %182, %185 : vector<8x256xi1>, vector<8x256xbf16>
    %187 = vector.extract_strided_slice %143 {offsets = [3, 0, 0], sizes = [1, 8, 8], strides = [1, 1, 1]} : vector<9x8x8xbf16> to vector<1x8x8xbf16>
    %188 = vector.shape_cast %187 : vector<1x8x8xbf16> to vector<8x8xbf16>
    %cst_43 = arith.constant dense<0.000000e+00> : vector<8x256xf32>
    %189 = tpu.matmul %188, %186, %cst_43 {dimension_numbers = #tpu.dot_dimension_numbers<[1], [0], [0], [1], [0, 0, 1, 1], [], []>} : vector<8x8xbf16>, vector<8x256xbf16>, vector<8x256xf32> -> vector<8x256xf32>
    %190 = arith.addf %179, %189 : vector<8x256xf32>
    %191 = vector.extract_strided_slice %143 {offsets = [4, 0, 0], sizes = [1, 8, 8], strides = [1, 1, 1]} : vector<9x8x8xbf16> to vector<1x8x8xbf16>
    %192 = vector.shape_cast %191 : vector<1x8x8xbf16> to vector<8x8xbf16>
    %cst_44 = arith.constant dense<0.000000e+00> : vector<8x256xf32>
    %193 = tpu.matmul %192, %142, %cst_44 {dimension_numbers = #tpu.dot_dimension_numbers<[1], [0], [0], [1], [0, 0, 1, 1], [], []>} : vector<8x8xbf16>, vector<8x256xbf16>, vector<8x256xf32> -> vector<8x256xf32>
    %194 = arith.addf %190, %193 : vector<8x256xf32>
    %195 = vector.extract_strided_slice %142 {offsets = [0, 1], sizes = [8, 255], strides = [1, 1]} : vector<8x256xbf16> to vector<8x255xbf16>
    %196 = vector.extract_strided_slice %142 {offsets = [0, 0], sizes = [8, 1], strides = [1, 1]} : vector<8x256xbf16> to vector<8x1xbf16>
    %197 = tpu.concatenate %195, %196 in 1 : vector<8x255xbf16>, vector<8x1xbf16> -> vector<8x256xbf16>
    %cst_45 = arith.constant 0.000000e+00 : bf16
    %198 = vector.shape_cast %40 : vector<1x256xi1> to vector<1x256xi1>
    %199 = vector.broadcast %198 : vector<1x256xi1> to vector<8x256xi1>
    %200 = vector.broadcast %cst_45 : bf16 to vector<8x256xbf16>
    %201 = arith.select %199, %197, %200 : vector<8x256xi1>, vector<8x256xbf16>
    %202 = vector.extract_strided_slice %143 {offsets = [5, 0, 0], sizes = [1, 8, 8], strides = [1, 1, 1]} : vector<9x8x8xbf16> to vector<1x8x8xbf16>
    %203 = vector.shape_cast %202 : vector<1x8x8xbf16> to vector<8x8xbf16>
    %cst_46 = arith.constant dense<0.000000e+00> : vector<8x256xf32>
    %204 = tpu.matmul %203, %201, %cst_46 {dimension_numbers = #tpu.dot_dimension_numbers<[1], [0], [0], [1], [0, 0, 1, 1], [], []>} : vector<8x8xbf16>, vector<8x256xbf16>, vector<8x256xf32> -> vector<8x256xf32>
    %205 = arith.addf %194, %204 : vector<8x256xf32>
    %206 = vector.extract_strided_slice %142 {offsets = [0, 15], sizes = [8, 241], strides = [1, 1]} : vector<8x256xbf16> to vector<8x241xbf16>
    %207 = vector.extract_strided_slice %142 {offsets = [0, 0], sizes = [8, 15], strides = [1, 1]} : vector<8x256xbf16> to vector<8x15xbf16>
    %208 = tpu.concatenate %206, %207 in 1 : vector<8x241xbf16>, vector<8x15xbf16> -> vector<8x256xbf16>
    %209 = arith.andi %36, %38 : vector<1x256xi1>
    %cst_47 = arith.constant 0.000000e+00 : bf16
    %210 = vector.shape_cast %209 : vector<1x256xi1> to vector<1x256xi1>
    %211 = vector.broadcast %210 : vector<1x256xi1> to vector<8x256xi1>
    %212 = vector.broadcast %cst_47 : bf16 to vector<8x256xbf16>
    %213 = arith.select %211, %208, %212 : vector<8x256xi1>, vector<8x256xbf16>
    %214 = vector.extract_strided_slice %143 {offsets = [6, 0, 0], sizes = [1, 8, 8], strides = [1, 1, 1]} : vector<9x8x8xbf16> to vector<1x8x8xbf16>
    %215 = vector.shape_cast %214 : vector<1x8x8xbf16> to vector<8x8xbf16>
    %cst_48 = arith.constant dense<0.000000e+00> : vector<8x256xf32>
    %216 = tpu.matmul %215, %213, %cst_48 {dimension_numbers = #tpu.dot_dimension_numbers<[1], [0], [0], [1], [0, 0, 1, 1], [], []>} : vector<8x8xbf16>, vector<8x256xbf16>, vector<8x256xf32> -> vector<8x256xf32>
    %217 = arith.addf %205, %216 : vector<8x256xf32>
    %218 = vector.extract_strided_slice %142 {offsets = [0, 16], sizes = [8, 240], strides = [1, 1]} : vector<8x256xbf16> to vector<8x240xbf16>
    %219 = vector.extract_strided_slice %142 {offsets = [0, 0], sizes = [8, 16], strides = [1, 1]} : vector<8x256xbf16> to vector<8x16xbf16>
    %220 = tpu.concatenate %218, %219 in 1 : vector<8x240xbf16>, vector<8x16xbf16> -> vector<8x256xbf16>
    %cst_49 = arith.constant 0.000000e+00 : bf16
    %221 = vector.shape_cast %36 : vector<1x256xi1> to vector<1x256xi1>
    %222 = vector.broadcast %221 : vector<1x256xi1> to vector<8x256xi1>
    %223 = vector.broadcast %cst_49 : bf16 to vector<8x256xbf16>
    %224 = arith.select %222, %220, %223 : vector<8x256xi1>, vector<8x256xbf16>
    %225 = vector.extract_strided_slice %143 {offsets = [7, 0, 0], sizes = [1, 8, 8], strides = [1, 1, 1]} : vector<9x8x8xbf16> to vector<1x8x8xbf16>
    %226 = vector.shape_cast %225 : vector<1x8x8xbf16> to vector<8x8xbf16>
    %cst_50 = arith.constant dense<0.000000e+00> : vector<8x256xf32>
    %227 = tpu.matmul %226, %224, %cst_50 {dimension_numbers = #tpu.dot_dimension_numbers<[1], [0], [0], [1], [0, 0, 1, 1], [], []>} : vector<8x8xbf16>, vector<8x256xbf16>, vector<8x256xf32> -> vector<8x256xf32>
    %228 = arith.addf %217, %227 : vector<8x256xf32>
    %229 = vector.extract_strided_slice %142 {offsets = [0, 17], sizes = [8, 239], strides = [1, 1]} : vector<8x256xbf16> to vector<8x239xbf16>
    %230 = vector.extract_strided_slice %142 {offsets = [0, 0], sizes = [8, 17], strides = [1, 1]} : vector<8x256xbf16> to vector<8x17xbf16>
    %231 = tpu.concatenate %229, %230 in 1 : vector<8x239xbf16>, vector<8x17xbf16> -> vector<8x256xbf16>
    %232 = arith.andi %36, %40 : vector<1x256xi1>
    %cst_51 = arith.constant 0.000000e+00 : bf16
    %233 = vector.shape_cast %232 : vector<1x256xi1> to vector<1x256xi1>
    %234 = vector.broadcast %233 : vector<1x256xi1> to vector<8x256xi1>
    %235 = vector.broadcast %cst_51 : bf16 to vector<8x256xbf16>
    %236 = arith.select %234, %231, %235 : vector<8x256xi1>, vector<8x256xbf16>
    %237 = vector.extract_strided_slice %143 {offsets = [8, 0, 0], sizes = [1, 8, 8], strides = [1, 1, 1]} : vector<9x8x8xbf16> to vector<1x8x8xbf16>
    %238 = vector.shape_cast %237 : vector<1x8x8xbf16> to vector<8x8xbf16>
    %cst_52 = arith.constant dense<0.000000e+00> : vector<8x256xf32>
    %239 = tpu.matmul %238, %236, %cst_52 {dimension_numbers = #tpu.dot_dimension_numbers<[1], [0], [0], [1], [0, 0, 1, 1], [], []>} : vector<8x8xbf16>, vector<8x256xbf16>, vector<8x256xf32> -> vector<8x256xf32>
    %240 = arith.addf %228, %239 : vector<8x256xf32>
    %cst_53 = arith.constant 0.000000e+00 : f32
    %241 = vector.broadcast %cst_53 : f32 to vector<8x256xf32>
    %242 = arith.maximumf %240, %241 : vector<8x256xf32>
    %243 = vector.extract_strided_slice %242 {offsets = [0, 1], sizes = [8, 255], strides = [1, 1]} : vector<8x256xf32> to vector<8x255xf32>
    %244 = vector.extract_strided_slice %242 {offsets = [0, 0], sizes = [8, 1], strides = [1, 1]} : vector<8x256xf32> to vector<8x1xf32>
    %245 = tpu.concatenate %243, %244 in 1 : vector<8x255xf32>, vector<8x1xf32> -> vector<8x256xf32>
    %246 = arith.maximumf %242, %245 : vector<8x256xf32>
    %247 = vector.extract_strided_slice %246 {offsets = [0, 16], sizes = [8, 240], strides = [1, 1]} : vector<8x256xf32> to vector<8x240xf32>
    %248 = vector.extract_strided_slice %246 {offsets = [0, 0], sizes = [8, 16], strides = [1, 1]} : vector<8x256xf32> to vector<8x16xf32>
    %249 = tpu.concatenate %247, %248 in 1 : vector<8x240xf32>, vector<8x16xf32> -> vector<8x256xf32>
    %250 = arith.maximumf %246, %249 : vector<8x256xf32>
    %c0_54 = arith.constant 0 : index
    %c0_55 = arith.constant 0 : index
    %251 = vector.load %arg4[%c0_54, %c0_55] : memref<256x64xf32, #tpu.memory_space<vmem>>, vector<256x64xf32>
    %c0_56 = arith.constant 0 : index
    %c0_57 = arith.constant 0 : index
    %c0_58 = arith.constant 0 : index
    %252 = vector.load %arg5[%c0_56, %c0_57, %c0_58] : memref<1x8x256xf32, #tpu.memory_space<vmem>>, vector<1x8x256xf32>
    %253 = vector.shape_cast %252 : vector<1x8x256xf32> to vector<8x256xf32>
    %254 = vector.shape_cast %242 : vector<8x256xf32> to vector<1x8x256xf32>
    tpu.vector_store %arg5[%c0_56, %c0_57, %c0_58], %254 {strides = array<i32>} : memref<1x8x256xf32, #tpu.memory_space<vmem>>, vector<1x8x256xf32>,
    %cst_59 = arith.constant dense<0.000000e+00> : vector<8x64xf32>
    %255 = tpu.matmul %250, %251, %cst_59 {dimension_numbers = #tpu.dot_dimension_numbers<[1], [0], [0], [1], [0, 0, 1, 1], [], []>} : vector<8x256xf32>, vector<256x64xf32>, vector<8x64xf32> -> vector<8x64xf32>
    %c0_60 = arith.constant 0 : index
    %c0_61 = arith.constant 0 : index
    %c0_62 = arith.constant 0 : index
    %256 = vector.load %arg6[%c0_60, %c0_61, %c0_62] : memref<1x8x64xf32, #tpu.memory_space<vmem>>, vector<1x8x64xf32>
    %257 = vector.shape_cast %256 : vector<1x8x64xf32> to vector<8x64xf32>
    %258 = vector.shape_cast %255 : vector<8x64xf32> to vector<1x8x64xf32>
    tpu.vector_store %arg6[%c0_60, %c0_61, %c0_62], %258 {strides = array<i32>} : memref<1x8x64xf32, #tpu.memory_space<vmem>>, vector<1x8x64xf32>,
    return
  }
  func.func @transform_0(%arg0: i32) -> (i32, i32) {
    %c0_i32 = arith.constant 0 : i32
    %c0_i32_0 = arith.constant 0 : i32
    return %c0_i32, %arg0 : i32, i32
  }
  func.func @transform_1(%arg0: i32) -> (i32, i32, i32) {
    %c0_i32 = arith.constant 0 : i32
    %c0_i32_0 = arith.constant 0 : i32
    %c0_i32_1 = arith.constant 0 : i32
    %c0_i32_2 = arith.constant 0 : i32
    return %c0_i32, %c0_i32_0, %c0_i32_1 : i32, i32, i32
  }
  func.func @transform_2(%arg0: i32) -> (i32, i32, i32) {
    %c0_i32 = arith.constant 0 : i32
    %c0_i32_0 = arith.constant 0 : i32
    %c0_i32_1 = arith.constant 0 : i32
    %c0_i32_2 = arith.constant 0 : i32
    return %c0_i32, %c0_i32_0, %c0_i32_1 : i32, i32, i32
  }
  func.func @transform_3(%arg0: i32) -> (i32, i32) {
    %c0_i32 = arith.constant 0 : i32
    %c0_i32_0 = arith.constant 0 : i32
    %c0_i32_1 = arith.constant 0 : i32
    return %c0_i32, %c0_i32_0 : i32, i32
  }
  func.func @transform_4(%arg0: i32) -> (i32, i32, i32) {
    %c0_i32 = arith.constant 0 : i32
    %c0_i32_0 = arith.constant 0 : i32
    %c0_i32_1 = arith.constant 0 : i32
    return %arg0, %c0_i32, %c0_i32_0 : i32, i32, i32
  }
  func.func @transform_5(%arg0: i32) -> (i32, i32, i32) {
    %c0_i32 = arith.constant 0 : i32
    %c0_i32_0 = arith.constant 0 : i32
    %c0_i32_1 = arith.constant 0 : i32
    return %arg0, %c0_i32, %c0_i32_0 : i32, i32, i32
  }
}

</mosaic_0001>

<bundles_post_ra>
// kernel: m_encoder_forward.1
= control target key start
LH: loop header
LB: loop body
LE: loop exit
PB: predicated region body
PF: predicated region fallthrough
CT: control target
= control target key end

     0   :  { %s1991_s18 = smov 0   ;;  %s2557_s0 = inlined_call_operand.vmem [shape: bf16[4,512], index: 0, kind: input, shape index: {}]   ;;  %s2558_s1 = inlined_call_operand.vmem [shape: bf16[9,8,4], index: 1, kind: input, shape index: {}]   ;;  %s2559_s2 = inlined_call_operand.vmem [shape: bf16[9,8,8], index: 2, kind: input, shape index: {}]   ;;  %s2560_s3 = inlined_call_operand.vmem [shape: f32[256,64], index: 3, kind: input, shape index: {}]   ;;  %s2561_s4 = inlined_call_operand.vmem [shape: f32[2,8,256], index: 4, kind: output, shape index: {0}]   ;;  %s2562_s5 = inlined_call_operand.vmem [shape: f32[2,8,64], index: 5, kind: output, shape index: {1}]  }
   0x1 LB: > { %s1997_s19 = sadd.s32 4294967295, %s1949_s18   ;;  %p1834_p0 = scmp.ge.s32.totalorder %s1949_s18, 1  ;;  %s1949_s18 = sphi %s1991_s18, %s16_s18  }
   0x2   : > { %p191_p1 = scmp.lt.s32.totalorder %s1949_s18, 3 }
   0x4   : > { %p192_p2 = pnand %p1834_p0, %p191_p1 }
   0x5   : > { %s1835_s20 = sshll.u32 (!%p192_p2), %s1997_s19, 1  ;;  %s1952_s25 = smov (!%p192_p2), 16  }
   0x6   : > { %195 = sbr.rel (%p192_p2) target bundleno = 1180 (0x49c), region = 36  ;;  %p224_p3 = scmp.lt.s32.totalorder (!%p192_p2), %s1835_s20, 3 }
   0x7   : > { %s1953_s26 = smov (!%p192_p2), 17   ;;  %s1954_s27 = smov (!%p192_p2), 15  }
   0x8   : > { %s1955_s28 = smov (!%p192_p2), 1   ;;  %s1956_s6 = smov (!%p192_p2), 127  }
   0x9   : > { %s1957_s7 = smov (!%p192_p2), 113   ;;  %s1958_s8 = smov (!%p192_p2), 112  }
   0xa   : > { %s1959_s9 = smov (!%p192_p2), 111   ;;  %p229_p4 = scmp.lt.s32.totalorder (!%p192_p2), %s1997_s19, 1 }
   0xb   : > { %v1951_v0 = vmov 0   ;;  %s2670_s20 = smov (!%p224_p3, %s1835_s20), 3  ;;  %vm2568_vm0 = vcmask 1041408   ;;  %v305_v4 = vld [vmem:[%s2558_s1 + $0x10] sm:$0xf]  ;;  %vm2570_vm1 = vcmask 31744   ;;  %v241_v5 = vlaneseq }
   0xc   : > { %424 = vmatprep.mubr.bf16.mxu1 %v1951_v0  ;;  %690 = vmatprep.mubr.bf16.mxu0 %v1951_v0  ;;  %s1836_s21 = sshll.u32 %s2670_s20, 1  ;;  %vm2565_vm7 = vmmov 1   ;;  %vm2563_vm13 = vcmask 130048   ;;  %v2597_v47 = vmov 0  ;;  %v302_v49 = vld [vmem:[%s2558_s1 + $0x4] sm:$0xf] }
   0xd   : > { %s227_s24 = scalar_lea.vmem %s2557_s0, %s1836_s21  ;;  %v242_v6 = vand.u32 127, %v241_v5  ;;  %v340_v13 = vshrl.u32 %v241_v5, 7  ;;  %v301_v5 = vld [vmem:[%s2558_s1] sm:$0xf]  ;;  %v2607_v14 = vmov 0  ;;  %s2672_s19 = smov (!%p229_p4, %s1997_s19), 1 }
   0xe   : > { %v1840_v1 = vld.sshfl [vmem:[%s227_s24] sm:$0x33 pattern:$0x76325410]  ;;  %v1040_v11 = vld [vmem:[%s2559_s2 + $0xc] sm:$0xf] }
   0xf   : > { %v318_v2 = vcombine.high %v1840_v1, %v1840_v1  ;;  %v653_v3 = vsel %vm2568_vm0, %v1840_v1, 0  ;;  %v243_v7 = vadd.s32 128, %v242_v6  ;;  %v248_v8 = vand.u32 15, %v242_v6  ;;  %s1879_s29 = sshll.u32 %s2672_s19, 4 }
  0x10   : > { %v272_v9 = vand.u32 255, %v242_v6  ;;  %v2055_v16 = vsub.s32 4, %v340_v13  ;;  %v2065_v18 = vsub.s32 0, %v340_v13  ;;  %v2605_v13 = vmov 0 }
  0x11   : > { %351 = vrot.lane.b32.xlu0 %v318_v2, %s1952_s25  ;;  %319 = vrot.lane.b32.xlu1 %v318_v2, %s1953_s26  ;;  %v255_v10 = vand.u32 15, %v243_v7  ;;  %vm2030_vm2 = vcmp.ge.s32.totalorder %v248_v8, 1  ;;  %vm2046_vm6 = vcmp.lt.s32.totalorder %v248_v8, 15  ;;  %v279_v21 = vand.u32 255, %v243_v7 }
  0x12   : > { %1849 = vmatprep.subr.msk.bf16.mxu0 %vm2568_vm0, %v318_v2  ;;  %vm2034_vm3 = vcmp.ge.s32.totalorder %v272_v9, 16 }
  0x13   : > { %673 = vmatpush1.bf16.msra.mxu0 %v653_v3  ;;  %vm2038_vm4 = vcmp.ge.s32.totalorder %v255_v10, 1  ;;  %vm331_vm5 = vmand %vm2034_vm3, %vm2030_vm2  ;;  %vm2057_vm10 = vcmp.lt.s32.totalorder %v255_v10, 15  ;;  %vm2076_vm14 = vcmp.lt.s32.totalorder %v279_v21, 240 }
  0x14   : > { %vm367_vm8 = vmpackc.low %vm2565_vm7, %vm2034_vm3  ;;  %vm2569_vm7 = vcmask 7168  }
  0x15   : > { %353 = vrot.lane.b32.xlu0 %v1840_v1, %s1952_s25  ;;  %321 = vrot.lane.b32.xlu1 %v1840_v1, %s1953_s26  ;;  %vm337_vm9 = vmpackc.low %vm2038_vm4, %vm331_vm5  ;;  %v368_v19 = vsel %vm367_vm8, 65537, %v1951_v0 }
  0x16   : > { %1850 = vmatmul.mubr.msk.bf16.vlgmr.msra.gmra.mxu0 %vm2570_vm1, %v305_v4  ;;  %vm495_vm11 = vmand %vm2034_vm3, %vm2046_vm6  ;;  %v338_v20 = vsel %vm337_vm9, 65537, %v1951_v0  ;;  %v376_v22 = vrot.slane %v368_v19, %v2055_v16  ;;  %v372_v25 = vrot.slane %v368_v19, %v2065_v18  ;;  %vm2564_vm3 = vcmask 138240  }
  0x17   : > { %856 = vmatprep.mubr.bf16.mxu0 %v1951_v0  ;;  %vm501_vm12 = vmpackc.low %vm2057_vm10, %vm495_vm11  ;;  %v342_v23 = vrot.slane %v338_v20, %v2065_v18  ;;  %v346_v24 = vrot.slane %v338_v20, %v2055_v16  ;;  %vm2566_vm11 = vcmask 121856  }
  0x18   : > { %v502_v28 = vsel %vm501_vm12, 65537, %v1951_v0  ;;  %vm2080_vm15 = vcmp.ne.s16.totalorder %v376_v22, 0  ;;  %vm2092_vm9 = vcmp.ne.s16.totalorder %v372_v25, 0  ;;  %vm583_vm12 = vmpackc.low %vm2038_vm4, %vm2030_vm2 }
  0x19   : > { %485 = vrot.lane.b32.xlu1 %v1840_v1, %s1954_s27  ;;  %483 = vrot.lane.b32.xlu0 %v318_v2, %s1954_s27  ;;  %vm2084_vm5 = vcmp.ne.s16.totalorder %v342_v23, 0  ;;  %vm2088_vm8 = vcmp.ne.s16.totalorder %v346_v24, 0  ;;  %v510_v34 = vrot.slane %v502_v28, %v2055_v16  ;;  %v506_v46 = vrot.slane %v502_v28, %v2065_v18 }
  0x1a   : > { %v584_v48 = vsel %vm583_vm12, 65537, %v1951_v0 }
  0x1b   : > { %v592_v55 = vrot.slane %v584_v48, %v2055_v16  ;;  %vm2137_vm12 = vcmp.ne.s16.totalorder %v506_v46, 0  ;;  %v588_v62 = vrot.slane %v584_v48, %v2065_v18  ;;  %v2623_v46 = vmov 0 }
  0x1c   : > { %v2625_v48 = vmov 0 }
  0x1d   : > { %569 = vrot.lane.b32.xlu1 %v1840_v1, %s1955_s28  ;;  %567 = vrot.lane.b32.xlu0 %v318_v2, %s1955_s28 }
  0x21   : > { %703 = vrot.lane.b32.xlu1 %v318_v2, %s1956_s6  ;;  %701 = vrot.lane.b32.xlu0 %v1840_v1, %s1956_s6 }
  0x25   : > { %785 = vrot.lane.b32.xlu1 %v318_v2, %s1957_s7  ;;  %783 = vrot.lane.b32.xlu0 %v1840_v1, %s1957_s7 }
  0x29   : > { %869 = vrot.lane.b32.xlu1 %v318_v2, %s1958_s8  ;;  %867 = vrot.lane.b32.xlu0 %v1840_v1, %s1958_s8 }
  0x2d   : > { %951 = vrot.lane.b32.xlu1 %v318_v2, %s1959_s9  ;;  %949 = vrot.lane.b32.xlu0 %v1840_v1, %s1959_s9 }
  0x83   : > { %v352_v26 = vpop.permute.xlu0 %351  ;;  %v320_v27 = vpop.permute.xlu1 %319 }
  0x87   : > { %v354_v35 = vpop.permute.xlu0 %353  ;;  %v322_v36 = vpop.permute.xlu1 %321 }
  0x88   : > { %v361_v37 = vsel %vm2563_vm13, %v352_v26, %v354_v35  ;;  %v356_v38 = vsel %vm2563_vm13, %v354_v35, %v352_v26  ;;  %v324_v39 = vsel %vm2564_vm3, %v322_v36, %v320_v27  ;;  %v329_v40 = vsel %vm2564_vm3, %v320_v27, %v322_v36  ;;  %vm796_vm13 = vmand %vm2076_vm14, %vm2038_vm4  ;;  %v303_v36 = vld [vmem:[%s2558_s1 + $0x8] sm:$0xf] }
  0x89   : > { %v380_v41 = vsel %vm2080_vm15, %v356_v38, 0  ;;  %v349_v42 = vsel %vm2084_vm5, %v329_v40, 0  ;;  %v350_v43 = vsel %vm2088_vm8, %v324_v39, 0  ;;  %v379_v44 = vsel %vm2092_vm9, %v361_v37, 0  ;;  %vm801_vm4 = vmpackc.low %vm796_vm13, %vm2030_vm2  ;;  %v307_v40 = vld [vmem:[%s2558_s1 + $0x18] sm:$0xf] }
  0x8a   : > { %1841 = vmatprep.subr.msk.bf16.mxu1 %vm2568_vm0, %v380_v41  ;;  %v387_v45 = vsel %vm2568_vm0, %v379_v44, 0  ;;  %vm2120_vm3 = vcmp.ne.s16.totalorder %v510_v34, 0  ;;  %v437_v52 = vsel %vm2568_vm0, %v349_v42, 0  ;;  %vm717_vm2 = vmpackc.low %vm2057_vm10, %vm2046_vm6  ;;  %v802_v60 = vsel %vm801_vm4, 65537, %v1951_v0 }
  0x8b   : > { %v2598_v47 = vsel %vm2120_vm3, 4294967295, %v2597_v47  ;;  %407 = vmatpush1.bf16.msra.mxu1 %v387_v45  ;;  %v486_v50 = vpop.permute.xlu1 %485  ;;  %v484_v51 = vpop.permute.xlu0 %483  ;;  %vm2152_vm13 = vcmp.ne.s16.totalorder %v592_v55, 0  ;;  %v718_v2 = vsel %vm717_vm2, 65537, %v1951_v0  ;;  %v806_v3 = vrot.slane %v802_v60, %v2065_v18 }
  0x8c   : > { %1843 = vmatprep.subr.msk.bf16.mxu1 %vm2568_vm0, %v350_v43  ;;  %v488_v53 = vsel %vm2566_vm11, %v486_v50, %v484_v51  ;;  %v493_v57 = vsel %vm2566_vm11, %v484_v51, %v486_v50  ;;  %vm962_vm11 = vmand %vm2076_vm14, %vm2057_vm10  ;;  %v810_v4 = vrot.slane %v802_v60, %v2055_v16  ;;  %v726_v10 = vrot.slane %v718_v2, %v2055_v16  ;;  %v304_v60 = vld [vmem:[%s2558_s1 + $0xc] sm:$0xf] }
  0x8d   : > { %v514_v54 = vsel %vm2120_vm3, %v488_v53, 0  ;;  %v513_v61 = vsel %vm2137_vm12, %v493_v57, 0  ;;  %vm967_vm4 = vmpackc.low %vm962_vm11, %vm2046_vm6  ;;  %vm2571_vm10 = vcmask 924672   ;;  %vm2174_vm2 = vcmp.ne.s16.totalorder %v588_v62, 0 }
  0x8e   : > { %1842 = vmatmul.mubr.msk.bf16.vlgmr.msra.gmra.mxu1 %vm2570_vm1, %v302_v49  ;;  %v519_v8 = vsel %vm2568_vm0, %v513_v61, 0  ;;  %vm2179_vm3 = vcmp.ne.s16.totalorder %v806_v3, 0  ;;  %v968_v19 = vsel %vm967_vm4, 65537, %v1951_v0  ;;  %vm2609_vm11 = vmmov 1   ;;  %v309_v61 = vld [vmem:[%s2558_s1 + $0x20] sm:$0xf] }
  0x8f   : > { %457 = vmatpush1.bf16.msra.mxu1 %v437_v52  ;;  %474 = vmatprep.mubr.bf16.mxu1 %v1951_v0  ;;  %v570_v58 = vpop.permute.xlu1 %569  ;;  %v568_v59 = vpop.permute.xlu0 %567  ;;  %v2606_v13 = vsel %vm2179_vm3, 4294967295, %v2605_v13  ;;  %v722_v21 = vrot.slane %v718_v2, %v2065_v18  ;;  %vm2202_vm6 = vcmp.ne.s16.totalorder %v726_v10, 0  ;;  %v972_v34 = vrot.slane %v968_v19, %v2065_v18 }
  0x90   : > { %1845 = vmatprep.subr.msk.bf16.mxu1 %vm2568_vm0, %v514_v54  ;;  %v572_v1 = vsel %vm2569_vm7, %v570_v58, %v568_v59  ;;  %v577_v12 = vsel %vm2569_vm7, %v568_v59, %v570_v58  ;;  %vm2183_vm0 = vcmp.ne.s16.totalorder %v810_v4, 0  ;;  %vm2192_vm7 = vmpackc.low %vm2076_vm14, %vm2609_vm11  ;;  %vm2615_vm14 = vcmask 1039360   ;;  %v306_v4 = vld [vmem:[%s2558_s1 + $0x14] sm:$0xf] }
  0x91   : > { %v596_v9 = vsel %vm2152_vm13, %v572_v1, 0  ;;  %v2608_v14 = vsel %vm2183_vm0, 4294967295, %v2607_v14  ;;  %v595_v24 = vsel %vm2174_vm2, %v577_v12, 0  ;;  %v976_v35 = vrot.slane %v968_v19, %v2055_v16 }
  0x92   : > { %v884_v38 = vsel %vm2192_vm7, 65537, %v1951_v0 }
  0x93   : > { %v704_v6 = vpop.permute.xlu1 %703  ;;  %v702_v7 = vpop.permute.xlu0 %701  ;;  %v892_v45 = vrot.slane %v884_v38, %v2055_v16  ;;  %v888_v55 = vrot.slane %v884_v38, %v2065_v18 }
  0x94   : > { %v711_v28 = vsel %vm2615_vm14, %v704_v6, %v702_v7  ;;  %vm2225_vm14 = vcmp.ne.s16.totalorder %v722_v21, 0 }
  0x95   : > { %v730_v43 = vsel %vm2202_vm6, %v711_v28, 0 }
  0x96   : > { %1844 = vmatmul.mubr.msk.bf16.vlgmr.msra.gmra.mxu1 %vm2570_vm1, %v301_v5  ;;  %vm2612_vm1 = vcmask 1041408  }
  0x97   : > { %539 = vmatpush1.bf16.msra.mxu1 %v519_v8  ;;  %556 = vmatprep.mubr.bf16.mxu1 %v1951_v0  ;;  %v786_v15 = vpop.permute.xlu1 %785  ;;  %v784_v17 = vpop.permute.xlu0 %783  ;;  %vm2616_vm4 = vmmov %vm2612_vm1 }
  0x98   : > { %1847 = vmatprep.subr.msk.bf16.mxu1 %vm2612_vm1, %v596_v9  ;;  %v788_v22 = vsel %vm2571_vm10, %v784_v17, %v786_v15  ;;  %v793_v23 = vsel %vm2571_vm10, %v786_v15, %v784_v17  ;;  %vm2617_vm11 = vmmov %vm2612_vm1  ;;  %vm2621_vm10 = vcmask 1039360  }
  0x99   : > { %v813_v26 = vsel %vm2179_vm3, %v788_v22, 0  ;;  %v814_v27 = vsel %vm2183_vm0, %v793_v23, 0  ;;  %v601_v41 = vsel %vm2617_vm11, %v595_v24, 0  ;;  %v706_v44 = vsel %vm2621_vm10, %v702_v7, %v704_v6  ;;  %v308_v6 = vld [vmem:[%s2558_s1 + $0x1c] sm:$0xf] }
  0x9a   : > { %1853 = vmatprep.subr.msk.bf16.mxu0 %vm2612_vm1, %v814_v27  ;;  %v819_v29 = vsel %vm2616_vm4, %v813_v26, 0  ;;  %vm2620_vm4 = vcmask 31744   ;;  %vm2235_vm0 = vcmp.ne.s16.totalorder %v972_v34, 0  ;;  %vm2239_vm11 = vcmp.ne.s16.totalorder %v976_v35, 0 }
  0x9b   : > { %v870_v37 = vpop.permute.xlu1 %869  ;;  %v868_v39 = vpop.permute.xlu0 %867  ;;  %839 = vmatpush1.bf16.msra.mxu0 %v819_v29  ;;  %vm2622_vm7 = vmmov %vm2620_vm4  ;;  %v2624_v46 = vsel %vm2235_vm0, 4294967295, %v2623_v46  ;;  %v2626_v48 = vsel %vm2239_vm11, 4294967295, %v2625_v48  ;;  %vm2575_vm1 = vcmask 916480   ;;  %vm2628_vm10 = vcmask 908288  }
  0x9c   : > { %vm2629_vm3 = vmmov %vm2628_vm10  ;;  %v729_v52 = vsel %vm2225_vm14, %v706_v44, 0  ;;  %v877_v58 = vsel %vm2575_vm1, %v870_v37, %v868_v39  ;;  %vm2272_vm1 = vcmp.ne.s16.totalorder %v888_v55, 0 }
  0x9e   : > { %1846 = vmatmul.mubr.msk.bf16.vlgmr.msra.gmra.mxu1 %vm2620_vm4, %v303_v36  ;;  %1854 = vmatmul.mubr.msk.bf16.vlgmr.msra.gmra.mxu0 %vm2622_vm7, %v307_v40  ;;  %vm2627_vm4 = vcmask 1041408   ;;  %vm2255_vm7 = vcmp.ne.s16.totalorder %v892_v45, 0 }
  0x9f   : > { %621 = vmatpush1.bf16.msra.mxu1 %v601_v41  ;;  %638 = vmatprep.mubr.bf16.mxu1 %v1951_v0  ;;  %v952_v49 = vpop.permute.xlu1 %951  ;;  %v950_v50 = vpop.permute.xlu0 %949  ;;  %v896_v62 = vsel %vm2255_vm7, %v877_v58, 0 }
  0xa0   : > { %1851 = vmatprep.subr.msk.bf16.mxu1 %vm2627_vm4, %v730_v43  ;;  %v954_v16 = vsel %vm2628_vm10, %v950_v50, %v952_v49  ;;  %v959_v51 = vsel %vm2629_vm3, %v952_v49, %v950_v50  ;;  %1022 = vmatprep.mubr.bf16.mxu0 %v1951_v0  ;;  %vm2632_vm3 = vmmov %vm2627_vm4 }
  0xa1   : > { %v979_v53 = vsel %vm2235_vm0, %v954_v16, 0  ;;  %v980_v54 = vsel %vm2239_vm11, %v959_v51, 0  ;;  %vm2633_vm4 = vmmov %vm2632_vm3  ;;  %vm2635_vm11 = vcmask 31744  }
  0xa2   : > { %1857 = vmatprep.subr.msk.bf16.mxu0 %vm2632_vm3, %v980_v54  ;;  %v985_v59 = vsel %vm2633_vm4, %v979_v53, 0  ;;  %vm2634_vm10 = vmmov %vm2632_vm3  ;;  %vm2638_vm3 = vcmask 916480  }
  0xa3   : > { %1005 = vmatpush1.bf16.msra.mxu0 %v985_v59  ;;  %v735_v18 = vsel %vm2634_vm10, %v729_v52, 0  ;;  %v872_v2 = vsel %vm2638_vm3, %v868_v39, %v870_v37  ;;  %vm2639_vm4 = vmmov %vm2635_vm11  ;;  %vm2644_vm3 = vcmask 130048  }
  0xa4   : > { %vm2640_vm0 = vmmov %vm2634_vm10  ;;  %v895_v3 = vsel %vm2272_vm1, %v872_v2, 0 }
  0xa5   : > { %vm2642_vm10 = vmmov %vm2639_vm4 }
  0xa6   : > { %1848 = vmatmul.mubr.msk.bf16.vlgmr.msra.gmra.mxu1 %vm2635_vm11, %v304_v60  ;;  %1858 = vmatmul.mubr.msk.bf16.vlgmr.msra.gmra.mxu0 %vm2639_vm4, %v309_v61  ;;  %vm2641_vm11 = vmmov %vm2640_vm0 }
  0xa7   : > { %755 = vmatpush1.bf16.msra.mxu1 %v735_v18  ;;  %772 = vmatprep.mubr.bf16.mxu1 %v1951_v0  ;;  %v901_v5 = vsel %vm2641_vm11, %v895_v3, 0  ;;  %vm1076_vm11 = vcmask 1043456  }
  0xa8   : > { %1855 = vmatprep.subr.msk.bf16.mxu1 %vm2640_vm0, %v896_v62  ;;  %1165 = vmatprep.mubr.bf16.mxu0 %v1951_v0  ;;  %vm2643_vm0 = vmmov %vm2639_vm4 }
  0xa9   : > { %vm2645_vm4 = vmmov %vm2644_vm3 }
  0xae   : > { %1852 = vmatmul.mubr.msk.bf16.vlgmr.msra.gmra.mxu1 %vm2642_vm10, %v306_v4  ;;  %vm1072_vm10 = vcmask 64512  }
  0xaf   : > { %921 = vmatpush1.bf16.msra.mxu1 %v901_v5  ;;  %938 = vmatprep.mubr.bf16.mxu1 %v1951_v0 }
  0xb6   : > { %1856 = vmatmul.mubr.msk.bf16.vlgmr.msra.gmra.mxu1 %vm2643_vm0, %v308_v6  ;;  %vm2646_vm0 = vcmask 138240  }
  0xb7   : > { %1115 = vmatprep.mubr.bf16.mxu1 %v1951_v0 }
  0xd6   : > { %v692_v7 = vpop.f32.mrf.mxu0 }
  0xd8   : > { %v694_v8 = vpop.f32.mrf.mxu0 }
  0xda   : > { %v696_v9 = vpop.f32.mrf.mxu0 }
  0xdc   : > { %v697_v10 = vpop.f32.mrf.mxu0 }
 0x14e   : > { %v426_v12 = vpop.f32.mrf.mxu1 }
 0x150   : > { %v428_v15 = vpop.f32.mrf.mxu1 }
 0x152   : > { %v430_v17 = vpop.f32.mrf.mxu1 }
 0x154   : > { %v431_v19 = vpop.f32.mrf.mxu1 }
 0x156   : > { %v476_v20 = vpop.f32.mrf.mxu1 }
 0x157   : > { %v477_v39 = vadd.f32 %v476_v20, %v426_v12 }
 0x158   : > { %v478_v21 = vpop.f32.mrf.mxu1 }
 0x159   : > { %v479_v43 = vadd.f32 %v478_v21, %v428_v15 }
 0x15a   : > { %v480_v22 = vpop.f32.mrf.mxu1 }
 0x15c   : > { %v481_v23 = vpop.f32.mrf.mxu1 }
 0x15e   : > { %v558_v24 = vpop.f32.mrf.mxu1  ;;  %v858_v26 = vpop.f32.mrf.mxu0 }
 0x15f   : > { %v565_v44 = vadd.f32 %v558_v24, %v477_v39 }
 0x160   : > { %v560_v27 = vpop.f32.mrf.mxu1  ;;  %v860_v28 = vpop.f32.mrf.mxu0 }
 0x161   : > { %v566_v50 = vadd.f32 %v560_v27, %v479_v43 }
 0x162   : > { %v562_v29 = vpop.f32.mrf.mxu1  ;;  %v862_v34 = vpop.f32.mrf.mxu0 }
 0x164   : > { %v563_v35 = vpop.f32.mrf.mxu1  ;;  %v863_v36 = vpop.f32.mrf.mxu0 }
 0x165   : > { %v1038_v35 = vld [vmem:[%s2559_s2 + $0x4] sm:$0xf] }
 0x166   : > { %v640_v37 = vpop.f32.mrf.mxu1  ;;  %v1024_v38 = vpop.f32.mrf.mxu0 }
 0x167   : > { %v647_v16 = vadd.f32 %v640_v37, %v565_v44 }
 0x168   : > { %v642_v40 = vpop.f32.mrf.mxu1  ;;  %v1026_v41 = vpop.f32.mrf.mxu0 }
 0x169   : > { %v648_v53 = vadd.f32 %v642_v40, %v566_v50  ;;  %v699_v55 = vadd.f32 %v692_v7, %v647_v16  ;;  %v1039_v16 = vld [vmem:[%s2559_s2 + $0x8] sm:$0xf] }
 0x16a   : > { %v644_v45 = vpop.f32.mrf.mxu1  ;;  %v1028_v49 = vpop.f32.mrf.mxu0 }
 0x16b   : > { %v700_v60 = vadd.f32 %v694_v8, %v648_v53 }
 0x16c   : > { %v645_v51 = vpop.f32.mrf.mxu1  ;;  %v1029_v52 = vpop.f32.mrf.mxu0 }
 0x16e   : > { %v774_v54 = vpop.f32.mrf.mxu1 }
 0x16f   : > { %v781_v59 = vadd.f32 %v774_v54, %v699_v55 }
 0x170   : > { %v776_v58 = vpop.f32.mrf.mxu1 }
 0x171   : > { %v782_v18 = vadd.f32 %v776_v58, %v700_v60  ;;  %v865_v2 = vadd.f32 %v858_v26, %v781_v59 }
 0x172   : > { %v778_v61 = vpop.f32.mrf.mxu1 }
 0x173   : > { %v866_v5 = vadd.f32 %v860_v28, %v782_v18 }
 0x174   : > { %v779_v62 = vpop.f32.mrf.mxu1 }
 0x176   : > { %v940_v3 = vpop.f32.mrf.mxu1 }
 0x177   : > { %v947_v4 = vadd.f32 %v940_v3, %v865_v2  ;;  %v1041_v3 = vld [vmem:[%s2559_s2 + $0x10] sm:$0xf] }
 0x178   : > { %v942_v6 = vpop.f32.mrf.mxu1 }
 0x179   : > { %v1031_v9 = vadd.f32 %v1024_v38, %v947_v4  ;;  %v948_v10 = vadd.f32 %v942_v6, %v866_v5 }
 0x17a   : > { %v944_v12 = vpop.f32.mrf.mxu1 }
 0x17b   : > { %v1033_v15 = vmax.f32 %v1031_v9, 0.0  ;;  %v1032_v17 = vadd.f32 %v1026_v41, %v948_v10  ;;  %v1037_v41 = vld [vmem:[%s2559_s2] sm:$0xf]  ;;  %v1042_v12 = vld [vmem:[%s2559_s2 + $0x14] sm:$0xf] }
 0x17c   : > { %v945_v19 = vpop.f32.mrf.mxu1 }
 0x17d   : > { %v2294_v20 = vpack.c.bf16 %v1033_v15, %v1033_v15  ;;  %v1034_v7 = vmax.f32 %v1032_v17, 0.0 }
 0x17f   : > { %v1036_v21 = vpack.c.bf16 %v1034_v7, %v1034_v7  ;;  %1062 = vrot.lane.b32.xlu1 %v2294_v20, %s1952_s25  ;;  %v1306_v55 = vsel %vm1076_vm11, %v2294_v20, 0 }
 0x181   : > { %1060 = vrot.lane.b32.xlu0 %v1036_v21, %s1952_s25  ;;  %s233_s25 = scalar_lea.vmem %s2561_s4, %s1879_s29 }
 0x183   : > { %1050 = vrot.lane.b32.xlu1 %v2294_v20, %s1953_s26 }
 0x185   : > { %1047 = vrot.lane.b32.xlu0 %v1036_v21, %s1953_s26 }
 0x187   : > { %1176 = vrot.lane.b32.xlu1 %v2294_v20, %s1954_s27 }
 0x189   : > { %1174 = vrot.lane.b32.xlu0 %v1036_v21, %s1954_s27 }
 0x18b   : > { %1240 = vrot.lane.b32.xlu1 %v2294_v20, %s1955_s28 }
 0x18d   : > { %1238 = vrot.lane.b32.xlu0 %v1036_v21, %s1955_s28 }
 0x18f   : > { %1356 = vrot.lane.b32.xlu1 %v1036_v21, %s1956_s6 }
 0x191   : > { %1354 = vrot.lane.b32.xlu0 %v2294_v20, %s1956_s6 }
 0x193   : > { %1420 = vrot.lane.b32.xlu1 %v1036_v21, %s1957_s7 }
 0x195   : > { %1418 = vrot.lane.b32.xlu0 %v2294_v20, %s1957_s7 }
 0x197   : > { %1484 = vrot.lane.b32.xlu1 %v1036_v21, %s1958_s8 }
 0x199   : > { %1482 = vrot.lane.b32.xlu0 %v2294_v20, %s1958_s8 }
 0x19b   : > { %1548 = vrot.lane.b32.xlu1 %v1036_v21, %s1959_s9 }
 0x19d   : > { %1546 = vrot.lane.b32.xlu0 %v2294_v20, %s1959_s9 }
 0x1f1   : > { %v1063_v8 = vpop.permute.xlu1 %1062 }
 0x1f3   : > { %v1061_v22 = vpop.permute.xlu0 %1060 }
 0x1f4   : > { %v1064_v23 = vsel %vm2644_vm3, %v1063_v8, %v1061_v22  ;;  %v1068_v24 = vsel %vm2645_vm4, %v1061_v22, %v1063_v8  ;;  %vm2647_vm3 = vmmov %vm2646_vm0  ;;  %vm2655_vm4 = vcmask 924672  }
 0x1f5   : > { %v1070_v26 = vsel %vm2092_vm9, %v1068_v24, 0  ;;  %v1071_v27 = vsel %vm2080_vm15, %v1064_v23, 0  ;;  %v1051_v28 = vpop.permute.xlu1 %1050  ;;  %vm2648_vm15 = vcmask 121856   ;;  %vm2651_vm9 = vcmask 7168   ;;  %v1044_v24 = vld [vmem:[%s2559_s2 + $0x1c] sm:$0xf] }
 0x1f6   : > { %1859 = vmatprep.subr.msk.bf16.mxu1 %vm1076_vm11, %v1071_v27  ;;  %v1078_v29 = vsel %vm1076_vm11, %v1070_v26, 0 }
 0x1f7   : > { %1098 = vmatpush1.bf16.msra.mxu1 %v1078_v29  ;;  %v1048_v34 = vpop.permute.xlu0 %1047 }
 0x1f8   : > { %v1052_v36 = vsel %vm2646_vm0, %v1051_v28, %v1048_v34  ;;  %v1056_v33 = vsel %vm2647_vm3, %v1048_v34, %v1051_v28  ;;  %vm2658_vm0 = vnez %v2608_v14  ;;  %vm2659_vm3 = vcmask 916480  }
 0x1f9   : > { %v1058_v30 = vsel %vm2084_vm5, %v1056_v33, 0  ;;  %v1059_v37 = vsel %vm2088_vm8, %v1052_v36, 0  ;;  %v1177_v38 = vpop.permute.xlu1 %1176  ;;  %vm2649_vm5 = vmmov %vm2648_vm15  ;;  %vm2650_vm8 = vnez %v2598_v47 }
 0x1fa   : > { %1860 = vmatmul.mubr.msk.bf16.vlgmr.msra.gmra.mxu1 %vm1072_vm10, %v1038_v35  ;;  %1861 = vmatprep.subr.msk.bf16.mxu0 %vm1076_vm11, %v1059_v37  ;;  %v1128_v39 = vsel %vm1076_vm11, %v1058_v30, 0 }
 0x1fb   : > { %1148 = vmatpush1.bf16.msra.mxu0 %v1128_v39  ;;  %v1175_v40 = vpop.permute.xlu0 %1174  ;;  %1227 = vmatprep.mubr.bf16.mxu1 %v1951_v0 }
 0x1fc   : > { %v1178_v31 = vsel %vm2648_vm15, %v1177_v38, %v1175_v40  ;;  %v1182_v32 = vsel %vm2649_vm5, %v1175_v40, %v1177_v38  ;;  %vm2660_vm15 = vmmov %vm2659_vm3  ;;  %vm2661_vm5 = vcmask 908288  }
 0x1fd   : > { %v1184_v43 = vsel %vm2137_vm12, %v1182_v32, 0  ;;  %v1185_v44 = vsel %vm2650_vm8, %v1178_v31, 0  ;;  %v1241_v45 = vpop.permute.xlu1 %1240  ;;  %vm2652_vm12 = vmmov %vm2651_vm9  ;;  %vm2664_vm8 = vnez %v2626_v48 }
 0x1fe   : > { %1862 = vmatmul.mubr.msk.bf16.vlgmr.msra.gmra.mxu0 %vm1072_vm10, %v1037_v41  ;;  %1863 = vmatprep.subr.msk.bf16.mxu1 %vm1076_vm11, %v1185_v44  ;;  %v1190_v49 = vsel %vm1076_vm11, %v1184_v43, 0 }
 0x1ff   : > { %1210 = vmatpush1.bf16.msra.mxu1 %v1190_v49  ;;  %v1239_v50 = vpop.permute.xlu0 %1238  ;;  %1291 = vmatprep.mubr.bf16.mxu0 %v1951_v0 }
 0x200   : > { %v1242_v56 = vsel %vm2651_vm9, %v1241_v45, %v1239_v50  ;;  %v1246_v47 = vsel %vm2652_vm12, %v1239_v50, %v1241_v45  ;;  %1867 = vmatprep.subr.msk.bf16.mxu1 %vm1076_vm11, %v1036_v21  ;;  %v1043_v21 = vld [vmem:[%s2559_s2 + $0x18] sm:$0xf]  ;;  %vm2667_vm9 = vmmov %vm2659_vm3 }
 0x201   : > { %v1248_v51 = vsel %vm2174_vm2, %v1246_v47, 0  ;;  %v1249_v52 = vsel %vm2152_vm13, %v1242_v56, 0  ;;  %v1357_v53 = vpop.permute.xlu1 %1356  ;;  %vm2653_vm2 = vcmask 1039360   ;;  %vm2668_vm12 = vmmov %vm2659_vm3 }
 0x202   : > { %1864 = vmatmul.mubr.msk.bf16.vlgmr.msra.gmra.mxu1 %vm1072_vm10, %v1039_v16  ;;  %1865 = vmatprep.subr.msk.bf16.mxu0 %vm1076_vm11, %v1249_v52  ;;  %v1254_v54 = vsel %vm1076_vm11, %v1248_v51, 0  ;;  %vm2654_vm13 = vmmov %vm2653_vm2 }
 0x203   : > { %1274 = vmatpush1.bf16.msra.mxu0 %v1254_v54  ;;  %1326 = vmatpush1.bf16.msra.mxu1 %v1306_v55  ;;  %v1355_v58 = vpop.permute.xlu0 %1354 }
 0x204   : > { %v1358_v63 = vsel %vm2653_vm2, %v1355_v58, %v1357_v53  ;;  %v1362_v59 = vsel %vm2654_vm13, %v1357_v53, %v1355_v58  ;;  %1343 = vmatprep.mubr.bf16.mxu1 %v1951_v0 }
 0x205   : > { %v1364_v60 = vsel %vm2225_vm14, %v1358_v63, 0  ;;  %v1365_v61 = vsel %vm2202_vm6, %v1362_v59, 0  ;;  %v1421_v18 = vpop.permute.xlu1 %1420  ;;  %vm2656_vm14 = vmmov %vm2655_vm4  ;;  %vm2657_vm6 = vnez %v2606_v13 }
 0x206   : > { %1866 = vmatmul.mubr.msk.bf16.vlgmr.msra.gmra.mxu0 %vm1072_vm10, %v1040_v11  ;;  %1869 = vmatprep.subr.msk.bf16.mxu0 %vm1076_vm11, %v1365_v61  ;;  %v1370_v62 = vsel %vm1076_vm11, %v1364_v60, 0 }
 0x207   : > { %1390 = vmatpush1.bf16.msra.mxu0 %v1370_v62  ;;  %v1419_v2 = vpop.permute.xlu0 %1418  ;;  %1407 = vmatprep.mubr.bf16.mxu0 %v1951_v0 }
 0x208   : > { %v1422_v42 = vsel %vm2655_vm4, %v1419_v2, %v1421_v18  ;;  %v1426_v25 = vsel %vm2656_vm14, %v1421_v18, %v1419_v2 }
 0x209   : > { %v1428_v4 = vsel %vm2657_vm6, %v1422_v42, 0  ;;  %v1429_v5 = vsel %vm2658_vm0, %v1426_v25, 0  ;;  %v1485_v6 = vpop.permute.xlu1 %1484 }
 0x20a   : > { %1868 = vmatmul.mubr.msk.bf16.vlgmr.msra.gmra.mxu1 %vm1072_vm10, %v1041_v3  ;;  %1871 = vmatprep.subr.msk.bf16.mxu1 %vm1076_vm11, %v1429_v5  ;;  %v1434_v9 = vsel %vm1076_vm11, %v1428_v4, 0 }
 0x20b   : > { %1454 = vmatpush1.bf16.msra.mxu1 %v1434_v9  ;;  %v1483_v10 = vpop.permute.xlu0 %1482  ;;  %1471 = vmatprep.mubr.bf16.mxu1 %v1951_v0 }
 0x20c   : > { %v1486_v13 = vsel %vm2659_vm3, %v1483_v10, %v1485_v6  ;;  %v1490_v14 = vsel %vm2660_vm15, %v1485_v6, %v1483_v10 }
 0x20d   : > { %v1492_v15 = vsel %vm2272_vm1, %v1486_v13, 0  ;;  %v1493_v17 = vsel %vm2255_vm7, %v1490_v14, 0  ;;  %v1549_v20 = vpop.permute.xlu1 %1548  ;;  %vm2662_vm1 = vmmov %vm2661_vm5  ;;  %vm2663_vm7 = vnez %v2624_v46  ;;  %v1045_v46 = vld [vmem:[%s2559_s2 + $0x20] sm:$0xf] }
 0x20e   : > { %1870 = vmatmul.mubr.msk.bf16.vlgmr.msra.gmra.mxu0 %vm1072_vm10, %v1042_v12  ;;  %1873 = vmatprep.subr.msk.bf16.mxu0 %vm1076_vm11, %v1493_v17  ;;  %v1498_v19 = vsel %vm1076_vm11, %v1492_v15, 0  ;;  %v1669_v15 = vld [vmem:[%s2560_s3 + $0xf8] sm:$0xff] }
 0x20f   : > { %1518 = vmatpush1.bf16.msra.mxu0 %v1498_v19  ;;  %v1547_v7 = vpop.permute.xlu0 %1546  ;;  %1535 = vmatprep.mubr.bf16.mxu0 %v1951_v0  ;;  %v1653_v17 = vld [vmem:[%s2560_s3 + $0x78] sm:$0xff]  ;;  %v1668_v19 = vld [vmem:[%s2560_s3 + $0xf0] sm:$0xff] }
 0x210   : > { %v1550_v1 = vsel %vm2661_vm5, %v1547_v7, %v1549_v20  ;;  %v1554_v57 = vsel %vm2662_vm1, %v1549_v20, %v1547_v7  ;;  %1880 = vmatprep.subr.mxu0 %v1669_v15  ;;  %v1652_v7 = vld [vmem:[%s2560_s3 + $0x70] sm:$0xff] }
 0x211   : > { %v1556_v8 = vsel %vm2663_vm7, %v1550_v1, 0  ;;  %v1557_v22 = vsel %vm2664_vm8, %v1554_v57, 0  ;;  %v1667_v1 = vld [vmem:[%s2560_s3 + $0xe8] sm:$0xff] }
 0x212   : > { %1872 = vmatmul.mubr.msk.bf16.vlgmr.msra.gmra.mxu1 %vm1072_vm10, %v1043_v21  ;;  %1875 = vmatprep.subr.msk.bf16.mxu1 %vm1076_vm11, %v1557_v22  ;;  %v1562_v23 = vsel %vm1076_vm11, %v1556_v8, 0  ;;  %v1651_v8 = vld [vmem:[%s2560_s3 + $0x68] sm:$0xff]  ;;  %vm2665_vm11 = vmmov %vm2653_vm2 }
 0x213   : > { %1582 = vmatpush1.bf16.msra.mxu1 %v1562_v23  ;;  %1599 = vmatprep.mubr.bf16.mxu1 %v1951_v0  ;;  %v1666_v23 = vld [vmem:[%s2560_s3 + $0xe0] sm:$0xff] }
 0x216   : > { %1874 = vmatmul.mubr.msk.bf16.vlgmr.msra.gmra.mxu0 %vm1072_vm10, %v1044_v24  ;;  %v1650_v24 = vld [vmem:[%s2560_s3 + $0x60] sm:$0xff] }
 0x217   : > { %1881 = vmatpush3.msra.mxu0 %v1653_v17 }
 0x218   : > { %1882 = vmatprep.subr.mxu0 %v1668_v19 }
 0x219   : > { %1883 = vmatpush3.msra.mxu0 %v1652_v7 }
 0x21a   : > { %1876 = vmatmul.mubr.msk.bf16.vlgmr.msra.gmra.mxu1 %vm1072_vm10, %v1045_v46  ;;  %1884 = vmatprep.subr.mxu0 %v1667_v1  ;;  %v1665_v46 = vld [vmem:[%s2560_s3 + $0xd8] sm:$0xff]  ;;  %vm2666_vm10 = vmmov %vm2653_vm2  ;;  %vm1742_vm2 = vcmask 523264  }
 0x21b   : > { %1885 = vmatpush3.msra.mxu0 %v1651_v8 }
 0x21c   : > { %1886 = vmatprep.subr.mxu0 %v1666_v23 }
 0x21d   : > { %1887 = vmatpush3.msra.mxu0 %v1650_v24 }
 0x21e   : > { %1888 = vmatprep.subr.mxu0 %v1665_v46 }
 0x2ba   : > { %v1117_v48 = vpop.f32.mrf.mxu1 }
 0x2bc   : > { %v1119_v26 = vpop.f32.mrf.mxu1 }
 0x2be   : > { %v1121_v27 = vpop.f32.mrf.mxu1  ;;  %v1167_v28 = vpop.f32.mrf.mxu0 }
 0x2bf   : > { %v1168_v43 = vadd.f32 %v1167_v28, %v1117_v48  ;;  %v1649_v48 = vld [vmem:[%s2560_s3 + $0x58] sm:$0xff]  ;;  %v1648_v27 = vld [vmem:[%s2560_s3 + $0x50] sm:$0xff]  ;;  %v1663_v28 = vld [vmem:[%s2560_s3 + $0xc8] sm:$0xff] }
 0x2c0   : > { %v1122_v29 = vpop.f32.mrf.mxu1  ;;  %v1169_v34 = vpop.f32.mrf.mxu0  ;;  %1889 = vmatpush3.msra.mxu0 %v1649_v48 }
 0x2c1   : > { %v1170_v49 = vadd.f32 %v1169_v34, %v1119_v26  ;;  %v1664_v26 = vld [vmem:[%s2560_s3 + $0xd0] sm:$0xff]  ;;  %v1647_v29 = vld [vmem:[%s2560_s3 + $0x48] sm:$0xff]  ;;  %v1662_v34 = vld [vmem:[%s2560_s3 + $0xc0] sm:$0xff] }
 0x2c2   : > { %v1171_v35 = vpop.f32.mrf.mxu0  ;;  %v1229_v36 = vpop.f32.mrf.mxu1  ;;  %1890 = vmatprep.subr.mxu0 %v1664_v26 }
 0x2c3   : > { %v1236_v50 = vadd.f32 %v1229_v36, %v1168_v43  ;;  %1891 = vmatpush3.msra.mxu0 %v1648_v27  ;;  %v1646_v35 = vld [vmem:[%s2560_s3 + $0x40] sm:$0xff]  ;;  %v1661_v36 = vld [vmem:[%s2560_s3 + $0xb8] sm:$0xff]  ;;  %v1640_v43 = vld [vmem:[%s2560_s3 + $0x10] sm:$0xff] }
 0x2c4   : > { %v1172_v33 = vpop.f32.mrf.mxu0  ;;  %v1231_v30 = vpop.f32.mrf.mxu1  ;;  %1892 = vmatprep.subr.mxu0 %v1663_v28 }
 0x2c5   : > { %v1237_v47 = vadd.f32 %v1231_v30, %v1170_v49  ;;  %1893 = vmatpush3.msra.mxu0 %v1647_v29  ;;  %v1645_v33 = vld [vmem:[%s2560_s3 + $0x38] sm:$0xff]  ;;  %v1660_v30 = vld [vmem:[%s2560_s3 + $0xb0] sm:$0xff]  ;;  %v1654_v49 = vld [vmem:[%s2560_s3 + $0x80] sm:$0xff] }
 0x2c6   : > { %v1233_v37 = vpop.f32.mrf.mxu1  ;;  %v1293_v0 = vpop.f32.mrf.mxu0  ;;  %1894 = vmatprep.subr.mxu0 %v1662_v34 }
 0x2c7   : > { %v1300_v51 = vadd.f32 %v1293_v0, %v1236_v50  ;;  %1895 = vmatpush3.msra.mxu0 %v1646_v35  ;;  %v1644_v37 = vld [vmem:[%s2560_s3 + $0x30] sm:$0xff]  ;;  %v1659_v0 = vld [vmem:[%s2560_s3 + $0xa8] sm:$0xff]  ;;  %v1638_v50 = vld [vmem:[%s2560_s3] sm:$0xff] }
 0x2c8   : > { %v1234_v38 = vpop.f32.mrf.mxu1  ;;  %v1295_v39 = vpop.f32.mrf.mxu0  ;;  %1896 = vmatprep.subr.mxu0 %v1661_v36 }
 0x2c9   : > { %v1301_v54 = vadd.f32 %v1295_v39, %v1237_v47  ;;  %1897 = vmatpush3.msra.mxu0 %v1645_v33  ;;  %v1643_v38 = vld [vmem:[%s2560_s3 + $0x28] sm:$0xff]  ;;  %v1658_v39 = vld [vmem:[%s2560_s3 + $0xa0] sm:$0xff] }
 0x2ca   : > { %v1297_v40 = vpop.f32.mrf.mxu0  ;;  %v1345_v41 = vpop.f32.mrf.mxu1  ;;  %1898 = vmatprep.subr.mxu0 %v1660_v30 }
 0x2cb   : > { %v1352_v55 = vadd.f32 %v1345_v41, %v1300_v51  ;;  %1899 = vmatpush3.msra.mxu0 %v1644_v37  ;;  %v1642_v40 = vld [vmem:[%s2560_s3 + $0x20] sm:$0xff]  ;;  %v1657_v41 = vld [vmem:[%s2560_s3 + $0x98] sm:$0xff] }
 0x2cc   : > { %v1298_v31 = vpop.f32.mrf.mxu0  ;;  %v1347_v32 = vpop.f32.mrf.mxu1  ;;  %1900 = vmatprep.subr.mxu0 %v1659_v0 }
 0x2cd   : > { %v1353_v63 = vadd.f32 %v1347_v32, %v1301_v54  ;;  %1901 = vmatpush3.msra.mxu0 %v1643_v38  ;;  %v1641_v31 = vld [vmem:[%s2560_s3 + $0x18] sm:$0xff]  ;;  %v1656_v32 = vld [vmem:[%s2560_s3 + $0x90] sm:$0xff] }
 0x2ce   : > { %v1349_v44 = vpop.f32.mrf.mxu1  ;;  %v1409_v45 = vpop.f32.mrf.mxu0  ;;  %1902 = vmatprep.subr.mxu0 %v1658_v39 }
 0x2cf   : > { %v1416_v59 = vadd.f32 %v1409_v45, %v1352_v55  ;;  %1903 = vmatpush3.msra.mxu0 %v1642_v40  ;;  %v1655_v44 = vld [vmem:[%s2560_s3 + $0x88] sm:$0xff] }
 0x2d0   : > { %v1350_v16 = vpop.f32.mrf.mxu1  ;;  %v1411_v56 = vpop.f32.mrf.mxu0  ;;  %1904 = vmatprep.subr.mxu0 %v1657_v41  ;;  %v1639_v45 = vld [vmem:[%s2560_s3 + $0x8] sm:$0xff] }
 0x2d1   : > { %v1417_v18 = vadd.f32 %v1411_v56, %v1353_v63  ;;  %1905 = vmatpush3.msra.mxu0 %v1641_v31 }
 0x2d2   : > { %v1413_v52 = vpop.f32.mrf.mxu0  ;;  %v1473_v53 = vpop.f32.mrf.mxu1  ;;  %1906 = vmatprep.subr.mxu0 %v1656_v32 }
 0x2d3   : > { %v1480_v62 = vadd.f32 %v1473_v53, %v1416_v59  ;;  %1907 = vmatpush3.msra.mxu0 %v1640_v43 }
 0x2d4   : > { %v1414_v58 = vpop.f32.mrf.mxu0  ;;  %v1475_v11 = vpop.f32.mrf.mxu1  ;;  %1908 = vmatprep.subr.mxu0 %v1655_v44 }
 0x2d5   : > { %v1481_v42 = vadd.f32 %v1475_v11, %v1417_v18  ;;  %1909 = vmatpush3.msra.mxu0 %v1639_v45 }
 0x2d6   : > { %v1477_v60 = vpop.f32.mrf.mxu1  ;;  %v1537_v61 = vpop.f32.mrf.mxu0  ;;  %1910 = vmatprep.subr.mxu0 %v1654_v49 }
 0x2d7   : > { %v1544_v25 = vadd.f32 %v1537_v61, %v1480_v62  ;;  %1911 = vmatpush3.msra.mxu0 %v1638_v50 }
 0x2d8   : > { %v1478_v2 = vpop.f32.mrf.mxu1  ;;  %v1539_v3 = vpop.f32.mrf.mxu0 }
 0x2d9   : > { %v1545_v6 = vadd.f32 %v1539_v3, %v1481_v42 }
 0x2da   : > { %v1601_v4 = vpop.f32.mrf.mxu1  ;;  %v1541_v5 = vpop.f32.mrf.mxu0 }
 0x2db   : > { %v1608_v9 = vadd.f32 %v1601_v4, %v1544_v25 }
 0x2dc   : > { %v1603_v10 = vpop.f32.mrf.mxu1  ;;  %v1542_v12 = vpop.f32.mrf.mxu0 }
 0x2dd   : > { %v2438_v13 = vmax.f32 %v1608_v9, 0.0  ;;  %v1609_v14 = vadd.f32 %v1603_v10, %v1545_v6 }
 0x2de   : > { %v1605_v20 = vpop.f32.mrf.mxu1 }
 0x2df   : > { %1670 = vst [vmem:[%s233_s25] sm:$0xff] %v2438_v13  ;;  %v2453_v21 = vmax.f32 %v1609_v14, 0.0 }
 0x2e0   : > { %v1606_v57 = vpop.f32.mrf.mxu1 }
 0x2e1   : > { %1671 = vst [vmem:[%s233_s25 + $0x8] sm:$0xff] %v2453_v21  ;;  %v1933_v22 = vpack.i.bf16 %v2453_v21, %v2438_v13  ;;  %s1839_s25 = sshll.u32 %s2672_s19, 3 }
 0x2e2   : > { %s237_s28 = scalar_lea.vmem %s2562_s5, %s1839_s25 }
 0x2e3   : > { %1934 = vrot.lane.b32.xlu0 %v1933_v22, %s1956_s6 }
 0x355   : > { %v1935_v16 = vpop.permute.xlu0 %1934 }
 0x356   : > { %v1937_v56 = vunpack.i.h.bf16 %v1935_v16  ;;  %v1936_v47 = vunpack.i.l.bf16 %v1935_v16 }
 0x358   : > { %v1618_v51 = vsel %vm2665_vm11, %v1936_v47, %v1937_v56  ;;  %v1622_v52 = vsel %vm2666_vm10, %v1937_v56, %v1936_v47 }
 0x359   : > { %v1623_v53 = vmax.f32 %v2438_v13, %v1618_v51  ;;  %v1624_v54 = vmax.f32 %v2453_v21, %v1622_v52 }
 0x35b   : > { %v1938_v55 = vpack.i.bf16 %v1624_v54, %v1623_v53 }
 0x35d   : > { %1939 = vrot.lane.b32.xlu1 %v1938_v55, %s1958_s8 }
 0x3cf   : > { %v1940_v58 = vpop.permute.xlu1 %1939 }
 0x3d0   : > { %v1942_v11 = vunpack.i.h.bf16 %v1940_v58  ;;  %v1941_v63 = vunpack.i.l.bf16 %v1940_v58 }
 0x3d2   : > { %v1631_v59 = vsel %vm2667_vm9, %v1941_v63, %v1942_v11  ;;  %v1635_v60 = vsel %vm2668_vm12, %v1942_v11, %v1941_v63 }
 0x3d3   : > { %v1636_v61 = vmax.f32 %v1623_v53, %v1631_v59  ;;  %v1637_v18 = vmax.f32 %v1624_v54, %v1635_v60 }
 0x3d5   : > { %1736 = vmatprep.mubr.f32.mxu0 %v1637_v18 }
 0x3d6   : > { %1737 = vmatmul.mubr.f32.vlgmr.msra.gmra.mxu0 %v1636_v61 }
 0x496   : > { %v1912_v62 = vpop.f32.mrf.mxu0 }
 0x498   : > { %v1913_v2 = vpop.f32.mrf.mxu0 }
 0x499   : > { %v1914_v3 = vadd.f32 %v1913_v2, %v1912_v62 }
 0x49b   : > { %1743 = vst.msk [vmem:[%s237_s28] sm:$0xff] %vm1742_vm2, %v1914_v3 }
 0x49c PF: > { %s16_s18 = sadd.s32 1, %s1949_s18  }
 0x49d   : > { %p13_p5 = scmp.ge.s32.totalorder %s16_s18, 4  }
 0x49f   :  { %15 = sbr.rel (!%p13_p5) target bundleno = 1 (0x1), region = 78 }

</bundles_post_ra>
